<compile_context>
chip_gen: v5e
topology: v5e:2x2
jax: 0.10.0
libtpu: 0.0.40
codegen_flags: <defaults>
</compile_context>

<pallas_src>
import jax
import jax.numpy as jnp
from jax.experimental import pallas as pl
from jax.experimental.pallas import tpu as pltpu


def _sigmoid(v):
    # exp on the EUP; approx reciprocal also runs on the EUP slot (frees the VALU).
    return pl.reciprocal(1.0 + jnp.exp(-v), approx=True)


def _vmem_capacity_bytes():
    try:
        info = pltpu.get_tpu_info()
        cap = int(getattr(info, "vmem_capacity_bytes", 0) or 0)
        if cap > 0:
            return cap
    except Exception:
        pass
    return 64 << 20  # conservative default (v7x per-TensorCore VMEM)


def _pick_h_chunk(h, tn, w, c, oup, budget_bytes=2 << 20):
    """Largest H chunk (multiple of 8 dividing H, or H itself) whose per-chunk f32
    transients (x chunk + ident + gated) stay under ~budget_bytes."""
    cands = sorted({d for d in range(8, h + 1, 8) if h % d == 0} | {h})
    per_row = max(1, tn * w * (c + 2 * oup) * 4)
    fit = [d for d in cands if d * per_row <= budget_bytes]
    return max(fit) if fit else cands[0]


def _per_sample_vmem_bytes(h, w, c, mip, oup, oup_pad):
    """Approximate VMEM bytes per batch element (used to choose the batch tile)."""
    ch_est = min(h, 64)
    b = 2 * h * w * c * 2                        # double-buffered bf16 x block
    b += (h + w) * c * 4                         # pooled x_h / x_w scratch
    b += h * oup * 4 + oup * 4                   # a_h scratch + max accumulator
    b += 2 * oup_pad * 4                         # double-buffered output block
    b += ch_est * w * (c + 2 * oup) * 4          # per-chunk f32 transients
    b += (h + w) * (c + mip + 2 * oup) * 4       # squeeze-MLP intermediates
    return b


def _pick_batch_tile(n, per_sample_bytes, budget_bytes):
    """Batch elements per grid step.

    Layout-valid TN: divides N and (TN % 8 == 0 or TN == N) so the (TN, oup_pad)
    output block obeys the (8, 128) rule.  Among tiles that fit the per-generation
    VMEM budget, prefer >= 4 grid steps (pipeline overlap + v7x megacore sharding),
    then >= 2, then 1; take the smallest such tile whose x block is still DMA-friendly
    (>= ~512 KiB), else the largest fitting one.
    """
    cands = [t for t in range(8, n + 1, 8) if n % t == 0]
    if not cands:
        return n                                  # N < 8 or no multiple-of-8 divisor
    fit = [t for t in cands if t * per_sample_bytes <= budget_bytes]
    if not fit:
        return cands[0]                           # smallest; vmem_limit adds headroom
    for min_steps in (4, 2, 1):
        ok = [t for t in fit if n // t >= min_steps]
        if ok:
            big = [t for t in ok if t * per_sample_bytes >= (512 << 10)]
            return min(big) if big else max(ok)
    return fit[0]


def _make_gating_kernel(TN, H, W, C, mip, oup, oup_pad, CH, apply_cv2, fuse_hw):
    NH = H // CH
    inv_w = 1.0 / float(W)
    inv_h = 1.0 / float(H)
    unroll = NH <= 8

    def kernel(*refs):
        if apply_cv2:
            (x_ref, w1_ref, t1_ref, whw_ref, bhw_ref, wfc_ref, w2_ref, b2_ref,
             o_ref, xh_ref, xw_ref, ah_ref, acc_ref) = refs
        else:
            (x_ref, w1_ref, t1_ref, whw_ref, bhw_ref, wfc_ref,
             o_ref, xh_ref, xw_ref, ah_ref, acc_ref) = refs
            w2_ref = b2_ref = None

        # ---- pass 1: directional average pools, H-chunked (no full f32 copy of x) ----
        xw_ref[...] = jnp.zeros((TN, W, C), jnp.float32)

        @pl.loop(0, NH, unroll=unroll)
        def _pool(i):
            off = pl.multiple_of(i * CH, CH)
            xc = x_ref[:, pl.ds(off, CH), :, :].astype(jnp.float32)   # (TN,CH,W,C)
            xh_ref[i] = jnp.sum(xc, axis=2) * inv_w                   # mean over W
            xw_ref[...] += jnp.sum(xc, axis=1)                        # accumulate over H

        x_h_rows = xh_ref[...].reshape(NH * TN * CH, C)               # == (TN*H, C)
        x_w_rows = (xw_ref[...] * inv_h).reshape(TN * W, C)           # mean over H

        # ---- squeeze MLP: one conv1 matmul on all pooled rows (BN scale pre-folded),
        #      h_swish, then one fused [conv_h | conv_w] matmul when 2*oup <= 128. ----
        p = jnp.concatenate([x_h_rows, x_w_rows], axis=0)             # (TN*(H+W), C)
        y = jnp.dot(p, w1_ref[...], preferred_element_type=jnp.float32) + t1_ref[...]
        y = y * (jnp.clip(y + 3.0, 0.0, 6.0) * (1.0 / 6.0))           # h_swish

        nh_rows = NH * TN * CH                                        # == TN*H
        if fuse_hw:
            a = _sigmoid(jnp.dot(y, whw_ref[...],
                                 preferred_element_type=jnp.float32) + bhw_ref[...])
            ah_rows = a[:nh_rows, :oup]
            aw_rows = a[nh_rows:, oup:]
        else:
            ah_rows = _sigmoid(
                jnp.dot(y[:nh_rows], whw_ref[:, :oup],
                        preferred_element_type=jnp.float32) + bhw_ref[:, :oup])
            aw_rows = _sigmoid(
                jnp.dot(y[nh_rows:], whw_ref[:, oup:],
                        preferred_element_type=jnp.float32) + bhw_ref[:, oup:])
        ah_ref[...] = ah_rows.reshape(NH, TN, CH, oup)
        a_w = aw_rows.reshape(TN, 1, W, oup)

        # ---- pass 2: per-chunk identity/cv2 + gating + running max pool (no full
        #      (TN,H,W,oup) tensor is ever live) ----
        acc_ref[...] = jnp.full((TN, oup), -jnp.inf, jnp.float32)

        @pl.loop(0, NH, unroll=unroll)
        def _gate(i):
            off = pl.multiple_of(i * CH, CH)
            xc = x_ref[:, pl.ds(off, CH), :, :]                       # (TN,CH,W,C) bf16
            if apply_cv2:
                ident = jnp.dot(xc.reshape(TN * CH * W, C), w2_ref[...],
                                preferred_element_type=jnp.float32) + b2_ref[...]
                ident = ident.reshape(TN, CH, W, oup)
            else:
                ident = xc.astype(jnp.float32)                        # C == oup
            a_hc = ah_ref[i]                                          # (TN,CH,oup)
            gated = ident * a_hc[:, :, None, :] * a_w                 # (TN,CH,W,oup)
            cmax = jnp.max(jnp.max(gated, axis=2), axis=1)            # W then H-chunk
            acc_ref[...] = jnp.maximum(acc_ref[...], cmax)

        # ---- fc (no bias) + ReLU; lane-dense padded output block ----
        out = jnp.dot(acc_ref[...], wfc_ref[...], preferred_element_type=jnp.float32)
        o_ref[...] = jnp.maximum(out, 0.0)

    return kernel


def gating_forward(x_nchw, params, *, h_chunk=None):
    """Pallas forward of Gating. x_nchw: (N, inp, H, W) float32 -> (N, oup, 1, 1)."""
    N, C, H, W = x_nchw.shape
    w1, b1 = params["conv1_w"], params["conv1_b"]               # (mip, C), (mip,)
    gamma, beta = params["bn_gamma"], params["bn_beta"]
    rmean, rvar, eps = params["bn_mean"], params["bn_var"], params["bn_eps"]
    wh, bh = params["conv_h_w"], params["conv_h_b"]             # (oup, mip), (oup,)
    ww, bw = params["conv_w_w"], params["conv_w_b"]             # (oup, mip), (oup,)
    wfc = params["fc_w"]                                        # (oup, 2*mip), no bias
    mip = w1.shape[0]
    oup = wh.shape[0]
    assert wfc.shape == (oup, 2 * mip) and oup == 2 * mip, (
        "Gating.fc consumes the oup-channel pooled tensor but was built with "
        "2*mip input channels; the module only works when oup == 2*mip.")

    apply_cv2 = (C != oup)
    fuse_hw = (2 * oup) <= 128
    oup_pad = ((oup + 127) // 128) * 128

    # ---- per-generation VMEM budget drives the batch tile and H chunk ----
    vmem_cap = _vmem_capacity_bytes()                 # 64 MiB on v7x, 128 on v5e/v6e
    tile_budget = int(0.6 * vmem_cap)                 # ~38 MiB (v7x) / ~76 MiB (v5e/v6e)
    per_sample = _per_sample_vmem_bytes(H, W, C, mip, oup, oup_pad)
    TN = _pick_batch_tile(N, per_sample, tile_budget)
    assert N % TN == 0
    CH = int(h_chunk) if h_chunk is not None else _pick_h_chunk(H, TN, W, C, oup)
    assert H % CH == 0, "h_chunk must divide H"
    NH = H // CH

    # ---- host-side layout plumbing (no in-kernel transposes / relayouts) ----
    f32 = jnp.float32
    x_nhwc = jnp.transpose(x_nchw, (0, 2, 3, 1)).astype(jnp.bfloat16)    # (N,H,W,C) bf16
    s = jnp.asarray(gamma, f32) / jnp.sqrt(jnp.asarray(rvar, f32) + eps)
    w1s = jnp.asarray(w1, f32).T * s[None, :]                            # (C,mip), BN fold
    t1 = ((jnp.asarray(b1, f32) - jnp.asarray(rmean, f32)) * s
          + jnp.asarray(beta, f32)).reshape(1, mip)
    whw = jnp.concatenate([jnp.asarray(wh, f32).T, jnp.asarray(ww, f32).T],
                          axis=1)                                        # (mip, 2*oup)
    bhw = jnp.concatenate([jnp.asarray(bh, f32),
                           jnp.asarray(bw, f32)]).reshape(1, 2 * oup)
    # Lane-dense output: pad fc output channels to a 128 multiple with zero columns.
    wfc_t = jnp.zeros((oup, oup_pad), f32).at[:, :oup].set(jnp.asarray(wfc, f32).T)

    args = [x_nhwc, w1s, t1, whw, bhw, wfc_t]
    in_specs = [
        pl.BlockSpec((TN, H, W, C), lambda n: (n, 0, 0, 0)),   # x, TN batch elems / step
        pl.BlockSpec((C, mip), lambda n: (0, 0)),              # conv1 weight (BN-scaled)
        pl.BlockSpec((1, mip), lambda n: (0, 0)),              # conv1-bias + BN shift
        pl.BlockSpec((mip, 2 * oup), lambda n: (0, 0)),        # [conv_h | conv_w] weight
        pl.BlockSpec((1, 2 * oup), lambda n: (0, 0)),          # [conv_h | conv_w] bias
        pl.BlockSpec((oup, oup_pad), lambda n: (0, 0)),        # fc weight (pre-T, padded)
    ]
    weight_bytes = sum(int(a.size) * a.dtype.itemsize for a in args[1:])
    if apply_cv2:
        w2 = jnp.asarray(params["cv2_w"], f32).T.astype(jnp.bfloat16)    # (C, oup) bf16
        b2 = jnp.asarray(params["cv2_b"], f32).reshape(1, oup)
        args += [w2, b2]
        in_specs += [pl.BlockSpec((C, oup), lambda n: (0, 0)),
                     pl.BlockSpec((1, oup), lambda n: (0, 0))]
        weight_bytes += int(w2.size) * 2 + int(b2.size) * 4

    scratch_shapes = [
        pltpu.VMEM((NH, TN, CH, C), f32),      # per-chunk x_h means
        pltpu.VMEM((TN, W, C), f32),           # x_w accumulator
        pltpu.VMEM((NH, TN, CH, oup), f32),    # a_h
        pltpu.VMEM((TN, oup), f32),            # running max-pool accumulator
    ]

    # Explicit VMEM limit (v7x has half the VMEM of v5e/v6e; never exceed 75% of it).
    est = (2 * TN * H * W * C * 2
           + TN * (H + W) * C * 4 + TN * H * oup * 4 + TN * oup * 4
           + 2 * TN * oup_pad * 4
           + TN * CH * W * (C + 2 * oup) * 4
           + TN * (H + W) * (C + mip + 2 * oup) * 4
           + 2 * weight_bytes)
    vmem_limit = int(min(int(0.75 * vmem_cap), max(32 << 20, 2 * est)))

    flops = (2 * N * (H + W) * C * mip + 2 * N * oup * oup_pad + 4 * N * H * W * oup
             + 2 * N * (H + W) * mip * (2 * oup if fuse_hw else oup))
    if apply_cv2:
        flops += 2 * N * H * W * C * oup
    transcendentals = N * (H + W) * (2 * oup if fuse_hw else oup)
    bytes_accessed = N * H * W * C * 2 + N * oup_pad * 4 + weight_bytes

    kernel = _make_gating_kernel(TN, H, W, C, mip, oup, oup_pad, CH, apply_cv2, fuse_hw)

    out_pad = pl.pallas_call(
        kernel,
        out_shape=jax.ShapeDtypeStruct((N, oup_pad), f32),
        grid_spec=pltpu.PrefetchScalarGridSpec(
            num_scalar_prefetch=0,
            grid=(N // TN,),
            in_specs=in_specs,
            out_specs=pl.BlockSpec((TN, oup_pad), lambda n: (n, 0)),
            scratch_shapes=scratch_shapes,
        ),
        compiler_params=pltpu.CompilerParams(
            dimension_semantics=("parallel",),          # v7x megacore shards the batch
            vmem_limit_bytes=vmem_limit),
        cost_estimate=pl.CostEstimate(
            flops=int(flops), transcendentals=int(transcendentals),
            bytes_accessed=int(bytes_accessed)),
    )(*args)

    return out_pad[:, :oup].reshape(N, oup, 1, 1)


def _gating_reference(x, params):
    """Pure-JAX reference of Gating.forward (BatchNorm2d in inference mode, f32)."""
    N, C, H, W = x.shape
    w1, b1 = params["conv1_w"], params["conv1_b"]
    gamma, beta = params["bn_gamma"], params["bn_beta"]
    rmean, rvar, eps = params["bn_mean"], params["bn_var"], params["bn_eps"]
    wh, bh = params["conv_h_w"], params["conv_h_b"]
    ww, bw = params["conv_w_w"], params["conv_w_b"]
    wfc = params["fc_w"]
    oup = wh.shape[0]

    if C == oup:
        identity = x
    else:
        identity = (jnp.einsum("oc,nchw->nohw", params["cv2_w"], x)
                    + params["cv2_b"][None, :, None, None])
    x_h = jnp.mean(x, axis=3, keepdims=True)                               # (N,C,H,1)
    x_w = jnp.transpose(jnp.mean(x, axis=2, keepdims=True), (0, 1, 3, 2))  # (N,C,W,1)
    y = jnp.concatenate([x_h, x_w], axis=2)                                # (N,C,H+W,1)
    y = jnp.einsum("mc,nchw->nmhw", w1, y) + b1[None, :, None, None]
    y = (gamma[None, :, None, None] * (y - rmean[None, :, None, None])
         / jnp.sqrt(rvar[None, :, None, None] + eps) + beta[None, :, None, None])
    y = y * jnp.clip(y + 3.0, 0.0, 6.0) / 6.0                              # h_swish
    y_h, y_w = y[:, :, :H, :], y[:, :, H:, :]
    y_w = jnp.transpose(y_w, (0, 1, 3, 2))                                 # (N,mip,1,W)
    a_h = jax.nn.sigmoid(jnp.einsum("om,nmhw->nohw", wh, y_h) + bh[None, :, None, None])
    a_w = jax.nn.sigmoid(jnp.einsum("om,nmhw->nohw", ww, y_w) + bw[None, :, None, None])
    out = identity * a_w * a_h                                             # (N,oup,H,W)
    pooled = jnp.max(out, axis=(2, 3))                                     # (N,oup)
    res = jnp.maximum(pooled @ wfc.T, 0.0)
    return res.reshape(N, oup, 1, 1)


if __name__ == "__main__":
    def make_params(key, C, mip, oup):
        ks = jax.random.split(key, 13)
        return dict(
            conv1_w=0.2 * jax.random.normal(ks[0], (mip, C), dtype=jnp.float32),
            conv1_b=0.1 * jax.random.normal(ks[1], (mip,), dtype=jnp.float32),
            bn_gamma=1.0 + 0.1 * jax.random.normal(ks[2], (mip,), dtype=jnp.float32),
            bn_beta=0.1 * jax.random.normal(ks[3], (mip,), dtype=jnp.float32),
            bn_mean=0.1 * jax.random.normal(ks[4], (mip,), dtype=jnp.float32),
            bn_var=0.5 + jax.random.uniform(ks[5], (mip,), dtype=jnp.float32),
            bn_eps=1e-5,
            conv_h_w=0.2 * jax.random.normal(ks[6], (oup, mip), dtype=jnp.float32),
            conv_h_b=0.1 * jax.random.normal(ks[7], (oup,), dtype=jnp.float32),
            conv_w_w=0.2 * jax.random.normal(ks[8], (oup, mip), dtype=jnp.float32),
            conv_w_b=0.1 * jax.random.normal(ks[9], (oup,), dtype=jnp.float32),
            cv2_w=0.2 * jax.random.normal(ks[10], (oup, C), dtype=jnp.float32),
            cv2_b=0.1 * jax.random.normal(ks[11], (oup,), dtype=jnp.float32),
            fc_w=0.2 * jax.random.normal(ks[12], (oup, 2 * mip), dtype=jnp.float32),
        )

    key = jax.random.PRNGKey(0)
    k1, k2, k3, k4 = jax.random.split(key, 4)

    # Case 1: inp != oup (cv2 path); h_chunk=8 exercises the 2-chunk pooling/gating loop.
    N, C, H, W = 2, 4, 16, 16
    mip, oup = 8, 16              # mip = max(8, C // 32); module requires oup == 2*mip
    params1 = make_params(k1, C, mip, oup)
    x1 = jax.random.normal(k2, (N, C, H, W), dtype=jnp.float32)
    out1 = gating_forward(x1, params1, h_chunk=8)
    jax.block_until_ready(out1)
    ref1 = _gating_reference(x1, params1)
    assert out1.shape == (N, oup, 1, 1)
    err1 = float(jnp.max(jnp.abs(out1 - ref1)))
    # bf16 x transfer + approx-reciprocal sigmoid -> looser tolerance vs. the f32 ref.
    assert jnp.allclose(out1, ref1, atol=5e-2, rtol=5e-2), f"case1 max abs err {err1:g}"

    # Case 2: inp == oup (identity path), single H chunk chosen automatically.
    N2, C2, H2, W2 = 2, 16, 8, 16
    params2 = make_params(k3, C2, mip, oup)        # C2 == oup -> cv2 unused
    x2 = jax.random.normal(k4, (N2, C2, H2, W2), dtype=jnp.float32)
    out2 = gating_forward(x2, params2)
    jax.block_until_ready(out2)
    ref2 = _gating_reference(x2, params2)
    err2 = float(jnp.max(jnp.abs(out2 - ref2)))
    assert jnp.allclose(out2, ref2, atol=5e-2, rtol=5e-2), f"case2 max abs err {err2:g}"

    print("KERNEL_OK")
</pallas_src>

<mosaic_0001>
module attributes {stable_mosaic.version = 11 : i64} {
  func.func @kernel(%arg0: i32, %arg1: memref<2x16x16x4xbf16, #tpu.memory_space<vmem>>, %arg2: memref<4x8xf32, #tpu.memory_space<vmem>>, %arg3: memref<1x8xf32, #tpu.memory_space<vmem>>, %arg4: memref<8x32xf32, #tpu.memory_space<vmem>>, %arg5: memref<1x32xf32, #tpu.memory_space<vmem>>, %arg6: memref<16x128xf32, #tpu.memory_space<vmem>>, %arg7: memref<4x16xbf16, #tpu.memory_space<vmem>>, %arg8: memref<1x16xf32, #tpu.memory_space<vmem>>, %arg9: memref<2x128xf32, #tpu.memory_space<vmem>>, %arg10: memref<2x2x8x4xf32, #tpu.memory_space<vmem>>, %arg11: memref<2x16x4xf32, #tpu.memory_space<vmem>>, %arg12: memref<2x2x8x16xf32, #tpu.memory_space<vmem>>, %arg13: memref<2x16xf32, #tpu.memory_space<vmem>>) attributes {dimension_semantics = [#tpu.dimension_semantics<parallel>], iteration_bounds = array<i64: 1>, scalar_prefetch = 0 : i64, scratch_operands = 4 : i64, tpu.core_type = #tpu.core_type<tc>, window_params = [{transform_indices = @transform_0, window_bounds = array<i64: 2, 16, 16, 4>}, {pipeline_mode = #tpu.pipeline_mode<synchronous>, transform_indices = @transform_1, window_bounds = array<i64: 4, 8>}, {pipeline_mode = #tpu.pipeline_mode<synchronous>, transform_indices = @transform_2, window_bounds = array<i64: 1, 8>}, {pipeline_mode = #tpu.pipeline_mode<synchronous>, transform_indices = @transform_3, window_bounds = array<i64: 8, 32>}, {pipeline_mode = #tpu.pipeline_mode<synchronous>, transform_indices = @transform_4, window_bounds = array<i64: 1, 32>}, {pipeline_mode = #tpu.pipeline_mode<synchronous>, transform_indices = @transform_5, window_bounds = array<i64: 16, 128>}, {pipeline_mode = #tpu.pipeline_mode<synchronous>, transform_indices = @transform_6, window_bounds = array<i64: 4, 16>}, {pipeline_mode = #tpu.pipeline_mode<synchronous>, transform_indices = @transform_7, window_bounds = array<i64: 1, 16>}, {transform_indices = @transform_8, window_bounds = array<i64: 2, 128>}]} {
    %cst = arith.constant 0.000000e+00 : f32
    %0 = vector.broadcast %cst : f32 to vector<2x16x4xf32>
    %c0 = arith.constant 0 : index
    %c0_0 = arith.constant 0 : index
    %c0_1 = arith.constant 0 : index
    %1 = vector.load %arg11[%c0, %c0_0, %c0_1] : memref<2x16x4xf32, #tpu.memory_space<vmem>>, vector<2x16x4xf32>
    tpu.vector_store %arg11[%c0, %c0_0, %c0_1], %0 {strides = array<i32>} : memref<2x16x4xf32, #tpu.memory_space<vmem>>, vector<2x16x4xf32>,
    %c0_i32 = arith.constant 0 : i32
    %c1_i32 = arith.constant 1 : i32
    %2 = arith.muli %c0_i32, %c1_i32 : i32
    %c0_i32_2 = arith.constant 0 : i32
    %3 = arith.addi %c0_i32_2, %2 : i32
    %c8_i32 = arith.constant 8 : i32
    %4 = arith.muli %3, %c8_i32 : i32
    %5 = tpu.assume_multiple %4, 8 : i32
    %c0_3 = arith.constant 0 : index
    %6 = arith.index_cast %5 : i32 to index
    %c0_4 = arith.constant 0 : index
    %c0_5 = arith.constant 0 : index
    %7 = vector.load %arg1[%c0_3, %6, %c0_4, %c0_5] : memref<2x16x16x4xbf16, #tpu.memory_space<vmem>>, vector<2x8x16x4xbf16>
    %8 = arith.extf %7 : vector<2x8x16x4xbf16> to vector<2x8x16x4xf32>
    %cst_6 = arith.constant dense<0.000000e+00> : vector<2x8x4xf32>
    %9 = vector.multi_reduction <add>, %8, %cst_6 [2] : vector<2x8x16x4xf32> to vector<2x8x4xf32>
    %cst_7 = arith.constant 6.250000e-02 : f32
    %10 = vector.broadcast %cst_7 : f32 to vector<2x8x4xf32>
    %11 = arith.mulf %9, %10 : vector<2x8x4xf32>
    %12 = arith.index_cast %3 : i32 to index
    %c0_8 = arith.constant 0 : index
    %c0_9 = arith.constant 0 : index
    %c0_10 = arith.constant 0 : index
    %13 = vector.load %arg10[%12, %c0_8, %c0_9, %c0_10] : memref<2x2x8x4xf32, #tpu.memory_space<vmem>>, vector<1x2x8x4xf32>
    %14 = vector.shape_cast %13 : vector<1x2x8x4xf32> to vector<2x8x4xf32>
    %15 = vector.shape_cast %11 : vector<2x8x4xf32> to vector<1x2x8x4xf32>
    tpu.vector_store %arg10[%12, %c0_8, %c0_9, %c0_10], %15 {strides = array<i32>} : memref<2x2x8x4xf32, #tpu.memory_space<vmem>>, vector<1x2x8x4xf32>,
    %c0_11 = arith.constant 0 : index
    %c0_12 = arith.constant 0 : index
    %c0_13 = arith.constant 0 : index
    %16 = vector.load %arg11[%c0_11, %c0_12, %c0_13] : memref<2x16x4xf32, #tpu.memory_space<vmem>>, vector<2x16x4xf32>
    %cst_14 = arith.constant dense<0.000000e+00> : vector<2x16x4xf32>
    %17 = vector.multi_reduction <add>, %8, %cst_14 [1] : vector<2x8x16x4xf32> to vector<2x16x4xf32>
    %18 = arith.addf %16, %17 : vector<2x16x4xf32>
    %c0_15 = arith.constant 0 : index
    %c0_16 = arith.constant 0 : index
    %c0_17 = arith.constant 0 : index
    %19 = vector.load %arg11[%c0_15, %c0_16, %c0_17] : memref<2x16x4xf32, #tpu.memory_space<vmem>>, vector<2x16x4xf32>
    tpu.vector_store %arg11[%c0_15, %c0_16, %c0_17], %18 {strides = array<i32>} : memref<2x16x4xf32, #tpu.memory_space<vmem>>, vector<2x16x4xf32>,
    %c1_i32_18 = arith.constant 1 : i32
    %c1_i32_19 = arith.constant 1 : i32
    %20 = arith.muli %c1_i32_18, %c1_i32_19 : i32
    %c0_i32_20 = arith.constant 0 : i32
    %21 = arith.addi %c0_i32_20, %20 : i32
    %c8_i32_21 = arith.constant 8 : i32
    %22 = arith.muli %21, %c8_i32_21 : i32
    %23 = tpu.assume_multiple %22, 8 : i32
    %c0_22 = arith.constant 0 : index
    %24 = arith.index_cast %23 : i32 to index
    %c0_23 = arith.constant 0 : index
    %c0_24 = arith.constant 0 : index
    %25 = vector.load %arg1[%c0_22, %24, %c0_23, %c0_24] : memref<2x16x16x4xbf16, #tpu.memory_space<vmem>>, vector<2x8x16x4xbf16>
    %26 = arith.extf %25 : vector<2x8x16x4xbf16> to vector<2x8x16x4xf32>
    %cst_25 = arith.constant dense<0.000000e+00> : vector<2x8x4xf32>
    %27 = vector.multi_reduction <add>, %26, %cst_25 [2] : vector<2x8x16x4xf32> to vector<2x8x4xf32>
    %cst_26 = arith.constant 6.250000e-02 : f32
    %28 = vector.broadcast %cst_26 : f32 to vector<2x8x4xf32>
    %29 = arith.mulf %27, %28 : vector<2x8x4xf32>
    %30 = arith.index_cast %21 : i32 to index
    %c0_27 = arith.constant 0 : index
    %c0_28 = arith.constant 0 : index
    %c0_29 = arith.constant 0 : index
    %31 = vector.load %arg10[%30, %c0_27, %c0_28, %c0_29] : memref<2x2x8x4xf32, #tpu.memory_space<vmem>>, vector<1x2x8x4xf32>
    %32 = vector.shape_cast %31 : vector<1x2x8x4xf32> to vector<2x8x4xf32>
    %33 = vector.shape_cast %29 : vector<2x8x4xf32> to vector<1x2x8x4xf32>
    tpu.vector_store %arg10[%30, %c0_27, %c0_28, %c0_29], %33 {strides = array<i32>} : memref<2x2x8x4xf32, #tpu.memory_space<vmem>>, vector<1x2x8x4xf32>,
    %c0_30 = arith.constant 0 : index
    %c0_31 = arith.constant 0 : index
    %c0_32 = arith.constant 0 : index
    %34 = vector.load %arg11[%c0_30, %c0_31, %c0_32] : memref<2x16x4xf32, #tpu.memory_space<vmem>>, vector<2x16x4xf32>
    %cst_33 = arith.constant dense<0.000000e+00> : vector<2x16x4xf32>
    %35 = vector.multi_reduction <add>, %26, %cst_33 [1] : vector<2x8x16x4xf32> to vector<2x16x4xf32>
    %36 = arith.addf %34, %35 : vector<2x16x4xf32>
    %c0_34 = arith.constant 0 : index
    %c0_35 = arith.constant 0 : index
    %c0_36 = arith.constant 0 : index
    %37 = vector.load %arg11[%c0_34, %c0_35, %c0_36] : memref<2x16x4xf32, #tpu.memory_space<vmem>>, vector<2x16x4xf32>
    tpu.vector_store %arg11[%c0_34, %c0_35, %c0_36], %36 {strides = array<i32>} : memref<2x16x4xf32, #tpu.memory_space<vmem>>, vector<2x16x4xf32>,
    %c2_i32 = arith.constant 2 : i32
    %c0_37 = arith.constant 0 : index
    %c0_38 = arith.constant 0 : index
    %c0_39 = arith.constant 0 : index
    %c0_40 = arith.constant 0 : index
    %38 = vector.load %arg10[%c0_37, %c0_38, %c0_39, %c0_40] : memref<2x2x8x4xf32, #tpu.memory_space<vmem>>, vector<2x2x8x4xf32>
    %39 = vector.shape_cast %38 : vector<2x2x8x4xf32> to vector<32x4xf32>
    %c0_41 = arith.constant 0 : index
    %c0_42 = arith.constant 0 : index
    %c0_43 = arith.constant 0 : index
    %40 = vector.load %arg11[%c0_41, %c0_42, %c0_43] : memref<2x16x4xf32, #tpu.memory_space<vmem>>, vector<2x16x4xf32>
    %cst_44 = arith.constant 6.250000e-02 : f32
    %41 = vector.broadcast %cst_44 : f32 to vector<2x16x4xf32>
    %42 = arith.mulf %40, %41 : vector<2x16x4xf32>
    %43 = vector.shape_cast %42 : vector<2x16x4xf32> to vector<32x4xf32>
    %44 = tpu.concatenate %39, %43 in 0 : vector<32x4xf32>, vector<32x4xf32> -> vector<64x4xf32>
    %c0_45 = arith.constant 0 : index
    %c0_46 = arith.constant 0 : index
    %45 = vector.load %arg2[%c0_45, %c0_46] : memref<4x8xf32, #tpu.memory_space<vmem>>, vector<4x8xf32>
    %cst_47 = arith.constant dense<0.000000e+00> : vector<64x8xf32>
    %46 = tpu.matmul %44, %45, %cst_47 {dimension_numbers = #tpu.dot_dimension_numbers<[1], [0], [0], [1], [0, 0, 1, 1], [], []>} : vector<64x4xf32>, vector<4x8xf32>, vector<64x8xf32> -> vector<64x8xf32>
    %c0_48 = arith.constant 0 : index
    %c0_49 = arith.constant 0 : index
    %47 = vector.load %arg3[%c0_48, %c0_49] : memref<1x8xf32, #tpu.memory_space<vmem>>, vector<1x8xf32>
    %48 = vector.broadcast %47 : vector<1x8xf32> to vector<64x8xf32>
    %49 = arith.addf %46, %48 : vector<64x8xf32>
    %cst_50 = arith.constant 3.000000e+00 : f32
    %50 = vector.broadcast %cst_50 : f32 to vector<64x8xf32>
    %51 = arith.addf %49, %50 : vector<64x8xf32>
    %cst_51 = arith.constant 0.000000e+00 : f32
    %cst_52 = arith.constant 6.000000e+00 : f32
    %52 = vector.broadcast %cst_51 : f32 to vector<64x8xf32>
    %53 = arith.maximumf %52, %51 : vector<64x8xf32>
    %54 = vector.broadcast %cst_52 : f32 to vector<64x8xf32>
    %55 = arith.minimumf %54, %53 : vector<64x8xf32>
    %cst_53 = arith.constant 0.166666672 : f32
    %56 = vector.broadcast %cst_53 : f32 to vector<64x8xf32>
    %57 = arith.mulf %55, %56 : vector<64x8xf32>
    %58 = arith.mulf %49, %57 : vector<64x8xf32>
    %c0_54 = arith.constant 0 : index
    %c0_55 = arith.constant 0 : index
    %59 = vector.load %arg4[%c0_54, %c0_55] : memref<8x32xf32, #tpu.memory_space<vmem>>, vector<8x32xf32>
    %cst_56 = arith.constant dense<0.000000e+00> : vector<64x32xf32>
    %60 = tpu.matmul %58, %59, %cst_56 {dimension_numbers = #tpu.dot_dimension_numbers<[1], [0], [0], [1], [0, 0, 1, 1], [], []>} : vector<64x8xf32>, vector<8x32xf32>, vector<64x32xf32> -> vector<64x32xf32>
    %c0_57 = arith.constant 0 : index
    %c0_58 = arith.constant 0 : index
    %61 = vector.load %arg5[%c0_57, %c0_58] : memref<1x32xf32, #tpu.memory_space<vmem>>, vector<1x32xf32>
    %62 = vector.broadcast %61 : vector<1x32xf32> to vector<64x32xf32>
    %63 = arith.addf %60, %62 : vector<64x32xf32>
    %cst_59 = arith.constant 0.000000e+00 : f32
    %64 = vector.broadcast %cst_59 : f32 to vector<64x32xf32>
    %65 = arith.subf %64, %63 : vector<64x32xf32>
    %66 = math.exp %65 : vector<64x32xf32>
    %cst_60 = arith.constant 1.000000e+00 : f32
    %67 = vector.broadcast %cst_60 : f32 to vector<64x32xf32>
    %68 = arith.addf %67, %66 : vector<64x32xf32>
    %69 = tpu.reciprocal %68 {approx = true} : vector<64x32xf32> -> vector<64x32xf32>
    %70 = vector.extract_strided_slice %69 {offsets = [0, 0], sizes = [32, 16], strides = [1, 1]} : vector<64x32xf32> to vector<32x16xf32>
    %71 = vector.extract_strided_slice %69 {offsets = [32, 16], sizes = [32, 16], strides = [1, 1]} : vector<64x32xf32> to vector<32x16xf32>
    %72 = vector.shape_cast %70 : vector<32x16xf32> to vector<2x2x8x16xf32>
    %c0_61 = arith.constant 0 : index
    %c0_62 = arith.constant 0 : index
    %c0_63 = arith.constant 0 : index
    %c0_64 = arith.constant 0 : index
    %73 = vector.load %arg12[%c0_61, %c0_62, %c0_63, %c0_64] : memref<2x2x8x16xf32, #tpu.memory_space<vmem>>, vector<2x2x8x16xf32>
    tpu.vector_store %arg12[%c0_61, %c0_62, %c0_63, %c0_64], %72 {strides = array<i32>} : memref<2x2x8x16xf32, #tpu.memory_space<vmem>>, vector<2x2x8x16xf32>,
    %74 = vector.shape_cast %71 : vector<32x16xf32> to vector<2x1x16x16xf32>
    %cst_65 = arith.constant 0xFF800000 : f32
    %75 = vector.broadcast %cst_65 : f32 to vector<2x16xf32>
    %c0_66 = arith.constant 0 : index
    %c0_67 = arith.constant 0 : index
    %76 = vector.load %arg13[%c0_66, %c0_67] : memref<2x16xf32, #tpu.memory_space<vmem>>, vector<2x16xf32>
    tpu.vector_store %arg13[%c0_66, %c0_67], %75 {strides = array<i32>} : memref<2x16xf32, #tpu.memory_space<vmem>>, vector<2x16xf32>,
    %c0_i32_68 = arith.constant 0 : i32
    %c1_i32_69 = arith.constant 1 : i32
    %77 = arith.muli %c0_i32_68, %c1_i32_69 : i32
    %c0_i32_70 = arith.constant 0 : i32
    %78 = arith.addi %c0_i32_70, %77 : i32
    %c8_i32_71 = arith.constant 8 : i32
    %79 = arith.muli %78, %c8_i32_71 : i32
    %80 = tpu.assume_multiple %79, 8 : i32
    %c0_72 = arith.constant 0 : index
    %81 = arith.index_cast %80 : i32 to index
    %c0_73 = arith.constant 0 : index
    %c0_74 = arith.constant 0 : index
    %82 = vector.load %arg1[%c0_72, %81, %c0_73, %c0_74] : memref<2x16x16x4xbf16, #tpu.memory_space<vmem>>, vector<2x8x16x4xbf16>
    %83 = vector.shape_cast %82 : vector<2x8x16x4xbf16> to vector<256x4xbf16>
    %c0_75 = arith.constant 0 : index
    %c0_76 = arith.constant 0 : index
    %84 = vector.load %arg7[%c0_75, %c0_76] : memref<4x16xbf16, #tpu.memory_space<vmem>>, vector<4x16xbf16>
    %cst_77 = arith.constant dense<0.000000e+00> : vector<256x16xf32>
    %85 = tpu.matmul %83, %84, %cst_77 {dimension_numbers = #tpu.dot_dimension_numbers<[1], [0], [0], [1], [0, 0, 1, 1], [], []>} : vector<256x4xbf16>, vector<4x16xbf16>, vector<256x16xf32> -> vector<256x16xf32>
    %c0_78 = arith.constant 0 : index
    %c0_79 = arith.constant 0 : index
    %86 = vector.load %arg8[%c0_78, %c0_79] : memref<1x16xf32, #tpu.memory_space<vmem>>, vector<1x16xf32>
    %87 = vector.broadcast %86 : vector<1x16xf32> to vector<256x16xf32>
    %88 = arith.addf %85, %87 : vector<256x16xf32>
    %89 = vector.shape_cast %88 : vector<256x16xf32> to vector<2x8x16x16xf32>
    %90 = arith.index_cast %78 : i32 to index
    %c0_80 = arith.constant 0 : index
    %c0_81 = arith.constant 0 : index
    %c0_82 = arith.constant 0 : index
    %91 = vector.load %arg12[%90, %c0_80, %c0_81, %c0_82] : memref<2x2x8x16xf32, #tpu.memory_space<vmem>>, vector<1x2x8x16xf32>
    %92 = vector.shape_cast %91 : vector<1x2x8x16xf32> to vector<2x8x16xf32>
    %93 = vector.shape_cast %92 : vector<2x8x16xf32> to vector<2x8x1x16xf32>
    %94 = vector.broadcast %93 : vector<2x8x1x16xf32> to vector<2x8x16x16xf32>
    %95 = arith.mulf %89, %94 : vector<2x8x16x16xf32>
    %96 = vector.broadcast %74 : vector<2x1x16x16xf32> to vector<2x8x16x16xf32>
    %97 = arith.mulf %95, %96 : vector<2x8x16x16xf32>
    %cst_83 = arith.constant dense<0xFF800000> : vector<2x8x16xf32>
    %98 = vector.multi_reduction <maximumf>, %97, %cst_83 [2] : vector<2x8x16x16xf32> to vector<2x8x16xf32>
    %cst_84 = arith.constant dense<0xFF800000> : vector<2x16xf32>
    %99 = vector.multi_reduction <maximumf>, %98, %cst_84 [1] : vector<2x8x16xf32> to vector<2x16xf32>
    %c0_85 = arith.constant 0 : index
    %c0_86 = arith.constant 0 : index
    %100 = vector.load %arg13[%c0_85, %c0_86] : memref<2x16xf32, #tpu.memory_space<vmem>>, vector<2x16xf32>
    %101 = arith.maximumf %100, %99 : vector<2x16xf32>
    %c0_87 = arith.constant 0 : index
    %c0_88 = arith.constant 0 : index
    %102 = vector.load %arg13[%c0_87, %c0_88] : memref<2x16xf32, #tpu.memory_space<vmem>>, vector<2x16xf32>
    tpu.vector_store %arg13[%c0_87, %c0_88], %101 {strides = array<i32>} : memref<2x16xf32, #tpu.memory_space<vmem>>, vector<2x16xf32>,
    %c1_i32_89 = arith.constant 1 : i32
    %c1_i32_90 = arith.constant 1 : i32
    %103 = arith.muli %c1_i32_89, %c1_i32_90 : i32
    %c0_i32_91 = arith.constant 0 : i32
    %104 = arith.addi %c0_i32_91, %103 : i32
    %c8_i32_92 = arith.constant 8 : i32
    %105 = arith.muli %104, %c8_i32_92 : i32
    %106 = tpu.assume_multiple %105, 8 : i32
    %c0_93 = arith.constant 0 : index
    %107 = arith.index_cast %106 : i32 to index
    %c0_94 = arith.constant 0 : index
    %c0_95 = arith.constant 0 : index
    %108 = vector.load %arg1[%c0_93, %107, %c0_94, %c0_95] : memref<2x16x16x4xbf16, #tpu.memory_space<vmem>>, vector<2x8x16x4xbf16>
    %109 = vector.shape_cast %108 : vector<2x8x16x4xbf16> to vector<256x4xbf16>
    %c0_96 = arith.constant 0 : index
    %c0_97 = arith.constant 0 : index
    %110 = vector.load %arg7[%c0_96, %c0_97] : memref<4x16xbf16, #tpu.memory_space<vmem>>, vector<4x16xbf16>
    %cst_98 = arith.constant dense<0.000000e+00> : vector<256x16xf32>
    %111 = tpu.matmul %109, %110, %cst_98 {dimension_numbers = #tpu.dot_dimension_numbers<[1], [0], [0], [1], [0, 0, 1, 1], [], []>} : vector<256x4xbf16>, vector<4x16xbf16>, vector<256x16xf32> -> vector<256x16xf32>
    %c0_99 = arith.constant 0 : index
    %c0_100 = arith.constant 0 : index
    %112 = vector.load %arg8[%c0_99, %c0_100] : memref<1x16xf32, #tpu.memory_space<vmem>>, vector<1x16xf32>
    %113 = vector.broadcast %112 : vector<1x16xf32> to vector<256x16xf32>
    %114 = arith.addf %111, %113 : vector<256x16xf32>
    %115 = vector.shape_cast %114 : vector<256x16xf32> to vector<2x8x16x16xf32>
    %116 = arith.index_cast %104 : i32 to index
    %c0_101 = arith.constant 0 : index
    %c0_102 = arith.constant 0 : index
    %c0_103 = arith.constant 0 : index
    %117 = vector.load %arg12[%116, %c0_101, %c0_102, %c0_103] : memref<2x2x8x16xf32, #tpu.memory_space<vmem>>, vector<1x2x8x16xf32>
    %118 = vector.shape_cast %117 : vector<1x2x8x16xf32> to vector<2x8x16xf32>
    %119 = vector.shape_cast %118 : vector<2x8x16xf32> to vector<2x8x1x16xf32>
    %120 = vector.broadcast %119 : vector<2x8x1x16xf32> to vector<2x8x16x16xf32>
    %121 = arith.mulf %115, %120 : vector<2x8x16x16xf32>
    %122 = vector.broadcast %74 : vector<2x1x16x16xf32> to vector<2x8x16x16xf32>
    %123 = arith.mulf %121, %122 : vector<2x8x16x16xf32>
    %cst_104 = arith.constant dense<0xFF800000> : vector<2x8x16xf32>
    %124 = vector.multi_reduction <maximumf>, %123, %cst_104 [2] : vector<2x8x16x16xf32> to vector<2x8x16xf32>
    %cst_105 = arith.constant dense<0xFF800000> : vector<2x16xf32>
    %125 = vector.multi_reduction <maximumf>, %124, %cst_105 [1] : vector<2x8x16xf32> to vector<2x16xf32>
    %c0_106 = arith.constant 0 : index
    %c0_107 = arith.constant 0 : index
    %126 = vector.load %arg13[%c0_106, %c0_107] : memref<2x16xf32, #tpu.memory_space<vmem>>, vector<2x16xf32>
    %127 = arith.maximumf %126, %125 : vector<2x16xf32>
    %c0_108 = arith.constant 0 : index
    %c0_109 = arith.constant 0 : index
    %128 = vector.load %arg13[%c0_108, %c0_109] : memref<2x16xf32, #tpu.memory_space<vmem>>, vector<2x16xf32>
    tpu.vector_store %arg13[%c0_108, %c0_109], %127 {strides = array<i32>} : memref<2x16xf32, #tpu.memory_space<vmem>>, vector<2x16xf32>,
    %c2_i32_110 = arith.constant 2 : i32
    %c0_111 = arith.constant 0 : index
    %c0_112 = arith.constant 0 : index
    %129 = vector.load %arg13[%c0_111, %c0_112] : memref<2x16xf32, #tpu.memory_space<vmem>>, vector<2x16xf32>
    %c0_113 = arith.constant 0 : index
    %c0_114 = arith.constant 0 : index
    %130 = vector.load %arg6[%c0_113, %c0_114] : memref<16x128xf32, #tpu.memory_space<vmem>>, vector<16x128xf32>
    %cst_115 = arith.constant dense<0.000000e+00> : vector<2x128xf32>
    %131 = tpu.matmul %129, %130, %cst_115 {dimension_numbers = #tpu.dot_dimension_numbers<[1], [0], [0], [1], [0, 0, 1, 1], [], []>} : vector<2x16xf32>, vector<16x128xf32>, vector<2x128xf32> -> vector<2x128xf32>
    %cst_116 = arith.constant 0.000000e+00 : f32
    %132 = vector.broadcast %cst_116 : f32 to vector<2x128xf32>
    %133 = arith.maximumf %131, %132 : vector<2x128xf32>
    %c0_117 = arith.constant 0 : index
    %c0_118 = arith.constant 0 : index
    %134 = vector.load %arg9[%c0_117, %c0_118] : memref<2x128xf32, #tpu.memory_space<vmem>>, vector<2x128xf32>
    tpu.vector_store %arg9[%c0_117, %c0_118], %133 {strides = array<i32>} : memref<2x128xf32, #tpu.memory_space<vmem>>, vector<2x128xf32>,
    return
  }
  func.func @transform_0(%arg0: i32) -> (i32, i32, i32, i32) {
    %c0_i32 = arith.constant 0 : i32
    %c0_i32_0 = arith.constant 0 : i32
    %c0_i32_1 = arith.constant 0 : i32
    %c0_i32_2 = arith.constant 0 : i32
    return %arg0, %c0_i32, %c0_i32_0, %c0_i32_1 : i32, i32, i32, i32
  }
  func.func @transform_1(%arg0: i32) -> (i32, i32) {
    %c0_i32 = arith.constant 0 : i32
    %c0_i32_0 = arith.constant 0 : i32
    %c0_i32_1 = arith.constant 0 : i32
    return %c0_i32, %c0_i32_0 : i32, i32
  }
  func.func @transform_2(%arg0: i32) -> (i32, i32) {
    %c0_i32 = arith.constant 0 : i32
    %c0_i32_0 = arith.constant 0 : i32
    %c0_i32_1 = arith.constant 0 : i32
    return %c0_i32, %c0_i32_0 : i32, i32
  }
  func.func @transform_3(%arg0: i32) -> (i32, i32) {
    %c0_i32 = arith.constant 0 : i32
    %c0_i32_0 = arith.constant 0 : i32
    %c0_i32_1 = arith.constant 0 : i32
    return %c0_i32, %c0_i32_0 : i32, i32
  }
  func.func @transform_4(%arg0: i32) -> (i32, i32) {
    %c0_i32 = arith.constant 0 : i32
    %c0_i32_0 = arith.constant 0 : i32
    %c0_i32_1 = arith.constant 0 : i32
    return %c0_i32, %c0_i32_0 : i32, i32
  }
  func.func @transform_5(%arg0: i32) -> (i32, i32) {
    %c0_i32 = arith.constant 0 : i32
    %c0_i32_0 = arith.constant 0 : i32
    %c0_i32_1 = arith.constant 0 : i32
    return %c0_i32, %c0_i32_0 : i32, i32
  }
  func.func @transform_6(%arg0: i32) -> (i32, i32) {
    %c0_i32 = arith.constant 0 : i32
    %c0_i32_0 = arith.constant 0 : i32
    %c0_i32_1 = arith.constant 0 : i32
    return %c0_i32, %c0_i32_0 : i32, i32
  }
  func.func @transform_7(%arg0: i32) -> (i32, i32) {
    %c0_i32 = arith.constant 0 : i32
    %c0_i32_0 = arith.constant 0 : i32
    %c0_i32_1 = arith.constant 0 : i32
    return %c0_i32, %c0_i32_0 : i32, i32
  }
  func.func @transform_8(%arg0: i32) -> (i32, i32) {
    %c0_i32 = arith.constant 0 : i32
    %c0_i32_0 = arith.constant 0 : i32
    return %arg0, %c0_i32 : i32, i32
  }
}

</mosaic_0001>

<bundles_post_ra>
// kernel: tpu_custom_call.1
= control target key start
LH: loop header
LB: loop body
LE: loop exit
PB: predicated region body
PF: predicated region fallthrough
CT: control target
= control target key end

     0   :  { %vm687_vm0 = vcmask 1043456   ;;  %vm31_vm1 = vcmask 31744   ;;  %s4054_s0 = inlined_call_operand.vmem [shape: bf16[2,16,16,4], index: 0, kind: input, shape index: {}]   ;;  %s4055_s1 = inlined_call_operand.vmem [shape: f32[4,8], index: 1, kind: input, shape index: {}]   ;;  %s4056_s2 = inlined_call_operand.vmem [shape: f32[1,8], index: 2, kind: input, shape index: {}]   ;;  %s4057_s3 = inlined_call_operand.vmem [shape: f32[8,32], index: 3, kind: input, shape index: {}]   ;;  %s4058_s4 = inlined_call_operand.vmem [shape: f32[1,32], index: 4, kind: input, shape index: {}]   ;;  %s4059_s5 = inlined_call_operand.vmem [shape: f32[16,128], index: 5, kind: input, shape index: {}]   ;;  %s4060_s6 = inlined_call_operand.vmem [shape: bf16[4,16], index: 6, kind: input, shape index: {}]   ;;  %s4061_s7 = inlined_call_operand.vmem [shape: f32[1,16], index: 7, kind: input, shape index: {}]   ;;  %s4062_s8 = inlined_call_operand.hbm [shape: f32[2,128], index: 8, kind: output, shape index: {}]  }
   0x1   :  { %v658_v0 = vld [vmem:[%s4055_s1] sm:$0xf]  ;;  %v2459_v2 = vld [vmem:[%s4054_s0 + $0x8] sm:$0xff]   ;;  %v2460_v7 = vld [vmem:[%s4054_s0 + $0x10] sm:$0xff]  }
   0x2   :  { %v2332_v1 = vld [vmem:[%s4054_s0] sm:$0xff]   ;;  %2089 = vmatpush.msk.msra.mxu0 %vm687_vm0, %v658_v0  ;;  %v2337_v5 = vunpack.c.l.bf16 %v2459_v2  ;;  %v2338_v6 = vunpack.c.h.bf16 %v2459_v2  ;;  %v2461_v8 = vld [vmem:[%s4054_s0 + $0x18] sm:$0xff]   ;;  %v2341_v10 = vunpack.c.l.bf16 %v2460_v7  ;;  %v2342_v11 = vunpack.c.h.bf16 %v2460_v7  ;;  %v2463_v14 = vld [vmem:[%s4054_s0 + $0x28] sm:$0xff]  }
   0x3   :  { %v2333_v3 = vunpack.c.l.bf16 %v2332_v1  ;;  %v2334_v4 = vunpack.c.h.bf16 %v2332_v1  ;;  %v2462_v9 = vld [vmem:[%s4054_s0 + $0x20] sm:$0xff]   ;;  %v2345_v12 = vunpack.c.l.bf16 %v2461_v8  ;;  %v2346_v13 = vunpack.c.h.bf16 %v2461_v8  ;;  %v2464_v15 = vld [vmem:[%s4054_s0 + $0x30] sm:$0xff]   ;;  %v2465_v16 = vld [vmem:[%s4054_s0 + $0x38] sm:$0xff]  }
   0x4   :  { %v2349_v17 = vunpack.c.l.bf16 %v2462_v9  ;;  %v2350_v18 = vunpack.c.h.bf16 %v2462_v9  ;;  %v2353_v19 = vunpack.c.l.bf16 %v2463_v14  ;;  %v2354_v20 = vunpack.c.h.bf16 %v2463_v14 }
   0x5   :  { %v2357_v21 = vunpack.c.l.bf16 %v2464_v15  ;;  %v2358_v22 = vunpack.c.h.bf16 %v2464_v15  ;;  %v2361_v23 = vunpack.c.l.bf16 %v2465_v16  ;;  %v2362_v24 = vunpack.c.h.bf16 %v2465_v16 }
   0x6   :  { %v2635_v25 = vsel %vm31_vm1, %v2333_v3, 0.0  ;;  %v2638_v26 = vsel %vm31_vm1, %v2334_v4, 0.0  ;;  %v2641_v27 = vsel %vm31_vm1, %v2337_v5, 0.0  ;;  %v2644_v28 = vsel %vm31_vm1, %v2338_v6, 0.0 }
   0x7   :  { %v105_v29 = vadd.f32 %v2638_v26, %v2635_v25  ;;  %v114_v30 = vadd.f32 %v2644_v28, %v2641_v27  ;;  %v2651_v31 = vsel %vm31_vm1, %v2341_v10, 0.0  ;;  %v2654_v32 = vsel %vm31_vm1, %v2342_v11, 0.0 }
   0x8   :  { %v123_v33 = vadd.f32 %v2654_v32, %v2651_v31  ;;  %v2659_v34 = vsel %vm31_vm1, %v2345_v12, 0.0  ;;  %v2662_v35 = vsel %vm31_vm1, %v2346_v13, 0.0  ;;  %v2665_v36 = vsel %vm31_vm1, %v2349_v17, 0.0 }
   0x9   :  { %v106_v37 = vrot.slane %v105_v29, 4  ;;  %v115_v38 = vrot.slane %v114_v30, 4  ;;  %v132_v39 = vadd.f32 %v2662_v35, %v2659_v34  ;;  %v2670_v40 = vsel %vm31_vm1, %v2350_v18, 0.0 }
   0xa   :  { %v124_v41 = vrot.slane %v123_v33, 4  ;;  %v141_v42 = vadd.f32 %v2670_v40, %v2665_v36  ;;  %v2675_v43 = vsel %vm31_vm1, %v2353_v19, 0.0  ;;  %v2678_v44 = vsel %vm31_vm1, %v2354_v20, 0.0 }
   0xb   :  { %4094 = vst [vmem:[#allocation9_spill] sm:$0xff] %v2678_v44  ;;  %v107_v45 = vadd.f32 %v106_v37, %v105_v29  ;;  %v116_v46 = vadd.f32 %v115_v38, %v114_v30  ;;  %v133_v47 = vrot.slane %v132_v39, 4  ;;  %v150_v48 = vadd.f32 %v2678_v44, %v2675_v43 }
   0xc   :  { %13 = vsyncpa [#allocation7], 0  ;;  %v125_v49 = vadd.f32 %v124_v41, %v123_v33  ;;  %v142_v50 = vrot.slane %v141_v42, 4  ;;  %v2683_v51 = vsel %vm31_vm1, %v2357_v21, 0.0  ;;  %v2686_v52 = vsel %vm31_vm1, %v2358_v22, 0.0  ;;  %s2047_s30 = sshll.u32 %s4062_s8, 4  ;;  %s2048_s30 = int_to_ptr.hbm [resolvable:$true] %s2047_s30 }
   0xd   :  { %4095 = vst [vmem:[#allocation10_spill] sm:$0xff] %v2686_v52  ;;  %v108_v53 = vrot.slane %v107_v45, 2  ;;  %v117_v54 = vrot.slane %v116_v46, 2  ;;  %v134_v55 = vadd.f32 %v133_v47, %v132_v39  ;;  %v151_v56 = vrot.slane %v150_v48, 4 }
   0xe   :  { %v126_v57 = vrot.slane %v125_v49, 2  ;;  %v143_v58 = vadd.f32 %v142_v50, %v141_v42  ;;  %v159_v59 = vadd.f32 %v2686_v52, %v2683_v51  ;;  %v2691_v60 = vsel %vm31_vm1, %v2361_v23, 0.0 }
   0xf   :  { %4096 = vst [vmem:[#allocation11_spill] sm:$0xff] %v2691_v60  ;;  %v109_v61 = vadd.f32 %v108_v53, %v107_v45  ;;  %v118_v62 = vadd.f32 %v117_v54, %v116_v46  ;;  %v135_v63 = vrot.slane %v134_v55, 2  ;;  %v152_v0 = vadd.f32 %v151_v56, %v150_v48  ;;  %v2467_v56 = vld [vmem:[%s4054_s0 + $0x88] sm:$0xff]  }
  0x10   :  { %v127_v1 = vadd.f32 %v126_v57, %v125_v49  ;;  %v144_v2 = vrot.slane %v143_v58, 2  ;;  %v160_v3 = vrot.slane %v159_v59, 4  ;;  %v2694_v4 = vsel %vm31_vm1, %v2362_v24, 0.0  ;;  %v922_v49 = vld [vmem:[%s4060_s6] sm:$0x3] }
  0x11   :  { %4097 = vst [vmem:[#allocation12_spill] sm:$0xff] %v2694_v4  ;;  %v110_v5 = vrot.slane %v109_v61, 1  ;;  %v119_v6 = vrot.slane %v118_v62, 1  ;;  %v136_v7 = vadd.f32 %v135_v63, %v134_v55  ;;  %v153_v8 = vrot.slane %v152_v0, 2  ;;  %v2466_v55 = vld [vmem:[%s4054_s0 + $0x80] sm:$0xff]  }
  0x12   :  { %v128_v9 = vrot.slane %v127_v1, 1  ;;  %v145_v10 = vadd.f32 %v144_v2, %v143_v58  ;;  %v161_v11 = vadd.f32 %v160_v3, %v159_v59  ;;  %v168_v12 = vadd.f32 %v2694_v4, %v2691_v60  ;;  %v2468_v58 = vld [vmem:[%s4054_s0 + $0x90] sm:$0xff]   ;;  %v2470_v2 = vld [vmem:[%s4054_s0 + $0xa0] sm:$0xff]  }
  0x13   :  { %v111_v13 = vadd.f32 %v110_v5, %v109_v61  ;;  %v120_v14 = vadd.f32 %v119_v6, %v118_v62  ;;  %v137_v15 = vrot.slane %v136_v7, 1  ;;  %v154_v16 = vadd.f32 %v153_v8, %v152_v0  ;;  %v2304_v0 = vld [vmem:[%s4054_s0 + $0x28] sm:$0xff] }
  0x14   :  { %v129_v17 = vadd.f32 %v128_v9, %v127_v1  ;;  %v146_v18 = vrot.slane %v145_v10, 1  ;;  %v162_v19 = vrot.slane %v161_v11, 2  ;;  %v169_v20 = vrot.slane %v168_v12, 4  ;;  %v2469_v1 = vld [vmem:[%s4054_s0 + $0x98] sm:$0xff]   ;;  %v2471_v8 = vld [vmem:[%s4054_s0 + $0xa8] sm:$0xff]   ;;  %v2472_v9 = vld [vmem:[%s4054_s0 + $0xb0] sm:$0xff]  }
  0x15   :  { %v138_v21 = vadd.f32 %v137_v15, %v136_v7  ;;  %v155_v22 = vrot.slane %v154_v16, 1  ;;  %v247_v23 = vmul.f32 0.0625, %v111_v13  ;;  %v248_v24 = vmul.f32 0.0625, %v120_v14  ;;  %v2473_v14 = vld [vmem:[%s4054_s0 + $0xb8] sm:$0xff]  }
  0x16   :  { %v147_v29 = vadd.f32 %v146_v18, %v145_v10  ;;  %v163_v30 = vadd.f32 %v162_v19, %v161_v11  ;;  %v170_v33 = vadd.f32 %v169_v20, %v168_v12  ;;  %v249_v37 = vmul.f32 0.0625, %v129_v17 }
  0x17   :  { %v156_v38 = vadd.f32 %v155_v22, %v154_v16  ;;  %v250_v39 = vmul.f32 0.0625, %v138_v21  ;;  %vm279_vm2 = vcmask 1041409   ;;  %vm281_vm3 = vcmask 1042434  }
  0x18   :  { %v164_v41 = vrot.slane %v163_v30, 1  ;;  %v171_v42 = vrot.slane %v170_v33, 2  ;;  %v251_v45 = vmul.f32 0.0625, %v147_v29  ;;  %v280_v46 = vsel %vm279_vm2, %v248_v24, %v247_v23 }
  0x19   :  { %v252_v47 = vmul.f32 0.0625, %v156_v38  ;;  %v282_v48 = vsel %vm281_vm3, %v249_v37, %v280_v46  ;;  %vm283_vm4 = vcmask 1043459   ;;  %vm285_vm5 = vcmask 1044484  }
  0x1a   :  { %v165_v50 = vadd.f32 %v164_v41, %v163_v30  ;;  %v172_v53 = vadd.f32 %v171_v42, %v170_v33  ;;  %v284_v54 = vsel %vm283_vm4, %v250_v39, %v282_v48  ;;  %vm287_vm6 = vcmask 1045509  }
  0x1b   :  { %v286_v57 = vsel %vm285_vm5, %v251_v45, %v284_v54  ;;  %vm289_vm7 = vcmask 1046534   ;;  %vm291_vm8 = vcmask 1047559   ;;  %vm1055_vm9 = vcmask 1041408  }
  0x1c   :  { %v173_v59 = vrot.slane %v172_v53, 1  ;;  %v253_v61 = vmul.f32 0.0625, %v165_v50  ;;  %v288_v62 = vsel %vm287_vm6, %v252_v47, %v286_v57  ;;  %v2716_v63 = vsel %vm1055_vm9, %v922_v49, 0 }
  0x1d   :  { %4098 = vst [vmem:[#allocation13_spill] sm:$0xff] %v2716_v63  ;;  %2490 = vmatpush.bf16.msra.mxu2 %v2716_v63  ;;  %v2365_v3 = vunpack.c.l.bf16 %v2466_v55  ;;  %v2366_v5 = vunpack.c.h.bf16 %v2466_v55  ;;  %v2369_v6 = vunpack.c.l.bf16 %v2467_v56  ;;  %v2370_v7 = vunpack.c.h.bf16 %v2467_v56 }
  0x1e   :  { %v174_v10 = vadd.f32 %v173_v59, %v172_v53  ;;  %v290_v11 = vsel %vm289_vm7, %v253_v61, %v288_v62  ;;  %v2373_v12 = vunpack.c.l.bf16 %v2468_v58  ;;  %v2374_v13 = vunpack.c.h.bf16 %v2468_v58 }
  0x1f   :  { %v2377_v15 = vunpack.c.l.bf16 %v2469_v1  ;;  %v2378_v16 = vunpack.c.h.bf16 %v2469_v1  ;;  %v2381_v17 = vunpack.c.l.bf16 %v2470_v2  ;;  %v2382_v18 = vunpack.c.h.bf16 %v2470_v2 }
  0x20   :  { %v254_v19 = vmul.f32 0.0625, %v174_v10  ;;  %2175 = vmatmul.msk.bf16.vlgmr.msra.gmra.mxu2 %vm31_vm1, %v2304_v0  ;;  %v2385_v20 = vunpack.c.l.bf16 %v2471_v8  ;;  %v2386_v21 = vunpack.c.h.bf16 %v2471_v8  ;;  %v2389_v22 = vunpack.c.l.bf16 %v2472_v9 }
  0x21   :  { %v2390_v23 = vunpack.c.h.bf16 %v2472_v9  ;;  %v2393_v24 = vunpack.c.l.bf16 %v2473_v14  ;;  %v2394_v29 = vunpack.c.h.bf16 %v2473_v14  ;;  %v2740_v30 = vsel %vm31_vm1, %v2365_v3, 0.0 }
  0x22   :  { %v292_v33 = vsel %vm291_vm8, %v254_v19, %v290_v11  ;;  %v2744_v37 = vsel %vm31_vm1, %v2366_v5, 0.0  ;;  %v2747_v38 = vsel %vm31_vm1, %v2369_v6, 0.0  ;;  %v2750_v39 = vsel %vm31_vm1, %v2370_v7, 0.0 }
  0x23   :  { %302 = vst.msk [vmem:[#allocation2] sm:$0xff] %vm31_vm1, %v292_v33  ;;  %v177_v41 = vadd.f32 %v2744_v37, %v2740_v30  ;;  %v186_v42 = vadd.f32 %v2750_v39, %v2747_v38  ;;  %v2758_v45 = vsel %vm31_vm1, %v2373_v12, 0.0  ;;  %v2761_v46 = vsel %vm31_vm1, %v2374_v13, 0.0 }
  0x24   :  { %4099 = vst [vmem:[#allocation14_spill] sm:$0xff] %v2761_v46  ;;  %v195_v47 = vadd.f32 %v2761_v46, %v2758_v45  ;;  %v2766_v48 = vsel %vm31_vm1, %v2377_v15, 0.0  ;;  %v2769_v49 = vsel %vm31_vm1, %v2378_v16, 0.0  ;;  %v2772_v50 = vsel %vm31_vm1, %v2381_v17, 0.0 }
  0x25   :  { %4100 = vst [vmem:[#allocation15_spill] sm:$0xff] %v2769_v49  ;;  %v178_v53 = vrot.slane %v177_v41, 4  ;;  %v187_v54 = vrot.slane %v186_v42, 4  ;;  %v204_v55 = vadd.f32 %v2769_v49, %v2766_v48  ;;  %v2777_v56 = vsel %vm31_vm1, %v2382_v18, 0.0 }
  0x26   :  { %4101 = vst [vmem:[#allocation16_spill] sm:$0xff] %v2772_v50  ;;  %v196_v57 = vrot.slane %v195_v47, 4  ;;  %v213_v58 = vadd.f32 %v2777_v56, %v2772_v50  ;;  %v2782_v59 = vsel %vm31_vm1, %v2385_v20, 0.0  ;;  %v2785_v61 = vsel %vm31_vm1, %v2386_v21, 0.0 }
  0x27   :  { %4102 = vst [vmem:[#allocation17_spill] sm:$0xff] %v2777_v56  ;;  %v179_v62 = vadd.f32 %v178_v53, %v177_v41  ;;  %v188_v0 = vadd.f32 %v187_v54, %v186_v42  ;;  %v205_v1 = vrot.slane %v204_v55, 4  ;;  %v222_v2 = vadd.f32 %v2785_v61, %v2782_v59 }
  0x28   :  { %4103 = vst [vmem:[#allocation18_spill] sm:$0xff] %v2782_v59  ;;  %v197_v3 = vadd.f32 %v196_v57, %v195_v47  ;;  %v214_v5 = vrot.slane %v213_v58, 4  ;;  %v2790_v6 = vsel %vm31_vm1, %v2389_v22, 0.0  ;;  %v2793_v7 = vsel %vm31_vm1, %v2390_v23, 0.0 }
  0x29   :  { %4104 = vst [vmem:[#allocation19_spill] sm:$0xff] %v2785_v61  ;;  %v180_v8 = vrot.slane %v179_v62, 2  ;;  %v189_v9 = vrot.slane %v188_v0, 2  ;;  %v206_v10 = vadd.f32 %v205_v1, %v204_v55  ;;  %v223_v11 = vrot.slane %v222_v2, 4 }
  0x2a   :  { %4105 = vst [vmem:[#allocation20_spill] sm:$0xff] %v2790_v6  ;;  %v646_v12 = vld [vmem:[#allocation2] sm:$0xff]  ;;  %v198_v13 = vrot.slane %v197_v3, 2  ;;  %v215_v14 = vadd.f32 %v214_v5, %v213_v58  ;;  %v231_v15 = vadd.f32 %v2793_v7, %v2790_v6  ;;  %v2798_v16 = vsel %vm31_vm1, %v2393_v24, 0.0 }
  0x2b   :  { %4106 = vst [vmem:[#allocation21_spill] sm:$0xff] %v2793_v7  ;;  %2090 = vmatmul.msk.f32.vlgmr.msra.gmra.mxu0 %vm31_vm1, %v646_v12  ;;  %v181_v17 = vadd.f32 %v180_v8, %v179_v62  ;;  %v190_v18 = vadd.f32 %v189_v9, %v188_v0  ;;  %v207_v19 = vrot.slane %v206_v10, 2  ;;  %v224_v20 = vadd.f32 %v223_v11, %v222_v2 }
  0x2c   :  { %4107 = vst [vmem:[#allocation22_spill] sm:$0xff] %v2798_v16  ;;  %v199_v21 = vadd.f32 %v198_v13, %v197_v3  ;;  %v216_v22 = vrot.slane %v215_v14, 2  ;;  %v232_v23 = vrot.slane %v231_v15, 4  ;;  %v2802_v33 = vsel %vm31_vm1, %v2394_v29, 0.0  ;;  %v2474_v29 = vld [vmem:[%s4054_s0 + $0x40] sm:$0xff]  }
  0x2d   :  { %4108 = vst [vmem:[#allocation23_spill] sm:$0xff] %v2802_v33  ;;  %v182_v41 = vrot.slane %v181_v17, 1  ;;  %v191_v42 = vrot.slane %v190_v18, 1  ;;  %v208_v47 = vadd.f32 %v207_v19, %v206_v10  ;;  %v225_v53 = vrot.slane %v224_v20, 2 }
  0x2e   :  { %v200_v54 = vrot.slane %v199_v21, 1  ;;  %v217_v55 = vadd.f32 %v216_v22, %v215_v14  ;;  %v233_v24 = vadd.f32 %v232_v23, %v231_v15  ;;  %v240_v57 = vadd.f32 %v2802_v33, %v2798_v16 }
  0x2f   :  { %v183_v58 = vadd.f32 %v182_v41, %v181_v17  ;;  %v192_v62 = vadd.f32 %v191_v42, %v190_v18  ;;  %v209_v0 = vrot.slane %v208_v47, 1  ;;  %v226_v1 = vadd.f32 %v225_v53, %v224_v20  ;;  %v2475_v17 = vld [vmem:[%s4054_s0 + $0x48] sm:$0xff]   ;;  %v2476_v53 = vld [vmem:[%s4054_s0 + $0x50] sm:$0xff]  }
  0x30   :  { %v201_v2 = vadd.f32 %v200_v54, %v199_v21  ;;  %v218_v3 = vrot.slane %v217_v55, 1  ;;  %v234_v5 = vrot.slane %v233_v24, 2  ;;  %v241_v8 = vrot.slane %v240_v57, 4  ;;  %v2477_v54 = vld [vmem:[%s4054_s0 + $0x58] sm:$0xff]  }
  0x31   :  { %v210_v9 = vadd.f32 %v209_v0, %v208_v47  ;;  %v227_v10 = vrot.slane %v226_v1, 1  ;;  %v255_v11 = vmul.f32 0.0625, %v183_v58  ;;  %v256_v12 = vmul.f32 0.0625, %v192_v62  ;;  %v2478_v62 = vld [vmem:[%s4054_s0 + $0x60] sm:$0xff]  }
  0x32   :  { %v219_v13 = vadd.f32 %v218_v3, %v217_v55  ;;  %v235_v14 = vadd.f32 %v234_v5, %v233_v24  ;;  %v242_v15 = vadd.f32 %v241_v8, %v240_v57  ;;  %v257_v19 = vmul.f32 0.0625, %v201_v2  ;;  %v2479_v5 = vld [vmem:[%s4054_s0 + $0x68] sm:$0xff]   ;;  %v2480_v8 = vld [vmem:[%s4054_s0 + $0x70] sm:$0xff]  }
  0x33   :  { %v228_v18 = vadd.f32 %v227_v10, %v226_v1  ;;  %v258_v20 = vmul.f32 0.0625, %v210_v9  ;;  %v293_v21 = vsel %vm279_vm2, %v256_v12, %v255_v11  ;;  %v2397_v22 = vunpack.c.l.bf16 %v2474_v29  ;;  %v2481_v12 = vld [vmem:[%s4054_s0 + $0x78] sm:$0xff]  }
  0x34   :  { %v236_v23 = vrot.slane %v235_v14, 1  ;;  %v243_v41 = vrot.slane %v242_v15, 2  ;;  %v259_v42 = vmul.f32 0.0625, %v219_v13  ;;  %v294_v47 = vsel %vm281_vm3, %v257_v19, %v293_v21 }
  0x35   :  { %v260_v55 = vmul.f32 0.0625, %v228_v18  ;;  %v295_v24 = vsel %vm283_vm4, %v258_v20, %v294_v47  ;;  %v2398_v57 = vunpack.c.h.bf16 %v2474_v29  ;;  %v2401_v58 = vunpack.c.l.bf16 %v2475_v17 }
  0x36   :  { %v237_v0 = vadd.f32 %v236_v23, %v235_v14  ;;  %v244_v1 = vadd.f32 %v243_v41, %v242_v15  ;;  %v296_v2 = vsel %vm285_vm5, %v259_v42, %v295_v24  ;;  %v2402_v3 = vunpack.c.h.bf16 %v2475_v17 }
  0x37   :  { %v297_v29 = vsel %vm287_vm6, %v260_v55, %v296_v2  ;;  %v2405_v9 = vunpack.c.l.bf16 %v2476_v53  ;;  %v2406_v10 = vunpack.c.h.bf16 %v2476_v53  ;;  %v2409_v11 = vunpack.c.l.bf16 %v2477_v54 }
  0x38   :  { %v245_v13 = vrot.slane %v244_v1, 1  ;;  %v261_v14 = vmul.f32 0.0625, %v237_v0  ;;  %v2410_v15 = vunpack.c.h.bf16 %v2477_v54  ;;  %v2413_v19 = vunpack.c.l.bf16 %v2478_v62 }
  0x39   :  { %v2414_v17 = vunpack.c.h.bf16 %v2478_v62  ;;  %v2417_v18 = vunpack.c.l.bf16 %v2479_v5  ;;  %v2418_v20 = vunpack.c.h.bf16 %v2479_v5  ;;  %v2421_v21 = vunpack.c.l.bf16 %v2480_v8 }
  0x3a   :  { %v246_v23 = vadd.f32 %v245_v13, %v244_v1  ;;  %v298_v41 = vsel %vm289_vm7, %v261_v14, %v297_v29  ;;  %v2422_v42 = vunpack.c.h.bf16 %v2480_v8  ;;  %v2425_v47 = vunpack.c.l.bf16 %v2481_v12 }
  0x3b   :  { %v2426_v55 = vunpack.c.h.bf16 %v2481_v12  ;;  %v2837_v53 = vsel %vm31_vm1, %v2397_v22, 0.0  ;;  %v2840_v24 = vsel %vm31_vm1, %v2398_v57, 0.0  ;;  %v2843_v0 = vsel %vm31_vm1, %v2401_v58, 0.0 }
  0x3c   :  { %v262_v54 = vmul.f32 0.0625, %v246_v23  ;;  %v413_v62 = vadd.f32 %v2840_v24, %v2837_v53  ;;  %v2848_v1 = vsel %vm31_vm1, %v2402_v3, 0.0  ;;  %v2851_v2 = vsel %vm31_vm1, %v2405_v9, 0.0 }
  0x3d   :  { %v422_v22 = vadd.f32 %v2848_v1, %v2843_v0  ;;  %v2856_v5 = vsel %vm31_vm1, %v2406_v10, 0.0  ;;  %v2859_v57 = vsel %vm31_vm1, %v2409_v11, 0.0  ;;  %v2862_v58 = vsel %vm31_vm1, %v2410_v15, 0.0 }
  0x3e   :  { %v299_v8 = vsel %vm291_vm8, %v262_v54, %v298_v41  ;;  %v414_v29 = vrot.slane %v413_v62, 4  ;;  %v431_v3 = vadd.f32 %v2856_v5, %v2851_v2  ;;  %v440_v9 = vadd.f32 %v2862_v58, %v2859_v57  ;;  %v2305_v54 = vld [vmem:[%s4054_s0 + $0x30] sm:$0xff] }
  0x3f   :  { %303 = vst.msk [vmem:[#allocation2 + $0x8] sm:$0xff] %vm31_vm1, %v299_v8  ;;  %v423_v12 = vrot.slane %v422_v22, 4  ;;  %v2871_v10 = vsel %vm31_vm1, %v2413_v19, 0.0  ;;  %v2874_v11 = vsel %vm31_vm1, %v2414_v17, 0.0  ;;  %v2877_v13 = vsel %vm31_vm1, %v2417_v18, 0.0  ;;  %2176 = vmatmul.msk.bf16.gmra.mxu2 %vm31_vm1, %v2305_v54 }
  0x40   :  { %4109 = vst [vmem:[#allocation24_spill] sm:$0xff] %v2877_v13  ;;  %v415_v14 = vadd.f32 %v414_v29, %v413_v62  ;;  %v432_v15 = vrot.slane %v431_v3, 4  ;;  %v441_v23 = vrot.slane %v440_v9, 4  ;;  %v449_v41 = vadd.f32 %v2874_v11, %v2871_v10 }
  0x41   :  { %v424_v8 = vadd.f32 %v423_v12, %v422_v22  ;;  %v2885_v19 = vsel %vm31_vm1, %v2418_v20, 0.0  ;;  %v2888_v17 = vsel %vm31_vm1, %v2421_v21, 0.0  ;;  %v2891_v18 = vsel %vm31_vm1, %v2422_v42, 0.0 }
  0x42   :  { %4110 = vst [vmem:[#allocation25_spill] sm:$0xff] %v2885_v19  ;;  %v416_v62 = vrot.slane %v415_v14, 2  ;;  %v433_v29 = vadd.f32 %v432_v15, %v431_v3  ;;  %v442_v63 = vadd.f32 %v441_v23, %v440_v9  ;;  %v450_v33 = vrot.slane %v449_v41, 4 }
  0x43   :  { %4111 = vst [vmem:[#allocation26_spill] sm:$0xff] %v2888_v17  ;;  %v425_v7 = vrot.slane %v424_v8, 2  ;;  %v458_v16 = vadd.f32 %v2885_v19, %v2877_v13  ;;  %v467_v20 = vadd.f32 %v2891_v18, %v2888_v17  ;;  %v2899_v22 = vsel %vm31_vm1, %v2425_v47, 0.0 }
  0x44   :  { %4112 = vst [vmem:[#allocation27_spill] sm:$0xff] %v2891_v18  ;;  %v417_v21 = vadd.f32 %v416_v62, %v415_v14  ;;  %v434_v12 = vrot.slane %v433_v29, 2  ;;  %v443_v42 = vrot.slane %v442_v63, 2  ;;  %v451_v61 = vadd.f32 %v450_v33, %v449_v41 }
  0x45   :  { %4113 = vst [vmem:[#allocation28_spill] sm:$0xff] %v2899_v22  ;;  %v426_v6 = vadd.f32 %v425_v7, %v424_v8  ;;  %v459_v3 = vrot.slane %v458_v16, 4  ;;  %v468_v9 = vrot.slane %v467_v20, 4  ;;  %v2902_v15 = vsel %vm31_vm1, %v2426_v55, 0.0 }
  0x46   :  { %4114 = vst [vmem:[#allocation29_spill] sm:$0xff] %v2902_v15  ;;  %v647_v23 = vld [vmem:[#allocation2 + $0x8] sm:$0xff]  ;;  %v418_v54 = vrot.slane %v417_v21, 1  ;;  %v435_v56 = vadd.f32 %v434_v12, %v433_v29  ;;  %v444_v4 = vadd.f32 %v443_v42, %v442_v63  ;;  %v452_v59 = vrot.slane %v451_v61, 2  ;;  %v1491_v63 = vld [vmem:[%s4060_s6] sm:$0x3] }
  0x47   :  { %2091 = vmatmul.msk.f32.gmra.mxu0 %vm31_vm1, %v647_v23  ;;  %v427_v18 = vrot.slane %v426_v6, 1  ;;  %v460_v47 = vadd.f32 %v459_v3, %v458_v16  ;;  %v469_v17 = vadd.f32 %v468_v9, %v467_v20  ;;  %v476_v14 = vadd.f32 %v2902_v15, %v2899_v22 }
  0x48   :  { %v419_v33 = vadd.f32 %v418_v54, %v417_v21  ;;  %v436_v7 = vrot.slane %v435_v56, 1  ;;  %v445_v41 = vrot.slane %v444_v4, 1  ;;  %v453_v8 = vadd.f32 %v452_v59, %v451_v61  ;;  %v2482_v59 = vld [vmem:[%s4054_s0 + $0xc0] sm:$0xff]  }
  0x49   :  { %v428_v62 = vadd.f32 %v427_v18, %v426_v6  ;;  %v461_v55 = vrot.slane %v460_v47, 2  ;;  %v470_v19 = vrot.slane %v469_v17, 2  ;;  %v477_v49 = vrot.slane %v476_v14, 4 }
  0x4a   :  { %v437_v29 = vadd.f32 %v436_v7, %v435_v56  ;;  %v446_v12 = vadd.f32 %v445_v41, %v444_v4  ;;  %v454_v42 = vrot.slane %v453_v8, 1  ;;  %v555_v16 = vmul.f32 0.0625, %v419_v33  ;;  %v2320_v56 = vld [vmem:[%s4054_s0 + $0x68] sm:$0xff] }
  0x4b   :  { %v462_v20 = vadd.f32 %v461_v55, %v460_v47  ;;  %v471_v3 = vadd.f32 %v470_v19, %v469_v17  ;;  %v478_v9 = vadd.f32 %v477_v49, %v476_v14  ;;  %v556_v23 = vmul.f32 0.0625, %v428_v62  ;;  %v2483_v49 = vld [vmem:[%s4054_s0 + $0xc8] sm:$0xff]   ;;  %v2484_v17 = vld [vmem:[%s4054_s0 + $0xd0] sm:$0xff]  }
  0x4c   :  { %v455_v61 = vadd.f32 %v454_v42, %v453_v8  ;;  %v557_v6 = vmul.f32 0.0625, %v437_v29  ;;  %v558_v18 = vmul.f32 0.0625, %v446_v12  ;;  %v1625_v21 = vsel %vm1055_vm9, %v1491_v63, 0  ;;  %v2485_v29 = vld [vmem:[%s4054_s0 + $0xd8] sm:$0xff]   ;;  %v2486_v12 = vld [vmem:[%s4054_s0 + $0xe0] sm:$0xff]  }
  0x4d   :  { %v463_v4 = vrot.slane %v462_v20, 1  ;;  %v472_v54 = vrot.slane %v471_v3, 1  ;;  %v479_v33 = vrot.slane %v478_v9, 2  ;;  %v587_v19 = vsel %vm279_vm2, %v556_v23, %v555_v16  ;;  %2491 = vmatpush.bf16.msra.mxu3 %v1625_v21  ;;  %1634 = vmatpush.bf16.msrb.mxu0 %v1625_v21  ;;  %v2943_v21 = vld [vmem:[%s4054_s0 + $0xf8] sm:$0xff]  }
  0x4e   :  { %v559_v47 = vmul.f32 0.0625, %v455_v61  ;;  %v588_v14 = vsel %vm281_vm3, %v557_v6, %v587_v19  ;;  %v2429_v7 = vunpack.c.l.bf16 %v2482_v59  ;;  %v2430_v41 = vunpack.c.h.bf16 %v2482_v59 }
  0x4f   :  { %v464_v8 = vadd.f32 %v463_v4, %v462_v20  ;;  %v473_v62 = vadd.f32 %v472_v54, %v471_v3  ;;  %v480_v55 = vadd.f32 %v479_v33, %v478_v9  ;;  %v589_v63 = vsel %vm283_vm4, %v558_v18, %v588_v14  ;;  %v2487_v20 = vld [vmem:[%s4054_s0 + $0xe8] sm:$0xff]   ;;  %v2488_v18 = vld [vmem:[%s4054_s0 + $0xf0] sm:$0xff]  }
  0x50   :  { %v590_v42 = vsel %vm285_vm5, %v559_v47, %v589_v63  ;;  %2287 = vmatmul.msk.bf16.vlgmr.msra.gmra.mxu3 %vm31_vm1, %v2320_v56  ;;  %v2433_v16 = vunpack.c.l.bf16 %v2483_v49  ;;  %v2434_v23 = vunpack.c.h.bf16 %v2483_v49  ;;  %v2437_v59 = vunpack.c.l.bf16 %v2484_v17 }
  0x51   :  { %v481_v3 = vrot.slane %v480_v55, 1  ;;  %v560_v9 = vmul.f32 0.0625, %v464_v8  ;;  %v561_v61 = vmul.f32 0.0625, %v473_v62  ;;  %v2438_v6 = vunpack.c.h.bf16 %v2484_v17 }
  0x52   :  { %v2441_v56 = vunpack.c.l.bf16 %v2485_v29  ;;  %v2442_v4 = vunpack.c.h.bf16 %v2485_v29  ;;  %v2445_v54 = vunpack.c.l.bf16 %v2486_v12  ;;  %v2446_v33 = vunpack.c.h.bf16 %v2486_v12 }
  0x53   :  { %v482_v19 = vadd.f32 %v481_v3, %v480_v55  ;;  %v591_v49 = vsel %vm287_vm6, %v560_v9, %v590_v42  ;;  %v2449_v47 = vunpack.c.l.bf16 %v2487_v20  ;;  %v2450_v14 = vunpack.c.h.bf16 %v2487_v20 }
  0x54   :  { %v592_v17 = vsel %vm289_vm7, %v561_v61, %v591_v49  ;;  %v2453_v8 = vunpack.c.l.bf16 %v2488_v18  ;;  %v2454_v62 = vunpack.c.h.bf16 %v2488_v18  ;;  %v2457_v63 = vunpack.c.l.bf16 %v2943_v21 }
  0x55   :  { %v562_v15 = vmul.f32 0.0625, %v482_v19  ;;  %v2458_v22 = vunpack.c.h.bf16 %v2943_v21  ;;  %v2950_v52 = vsel %vm31_vm1, %v2429_v7, 0.0  ;;  %v2953_v29 = vsel %vm31_vm1, %v2430_v41, 0.0 }
  0x56   :  { %4115 = vst [vmem:[#allocation30_spill] sm:$0xff] %v2953_v29  ;;  %v485_v55 = vadd.f32 %v2953_v29, %v2950_v52  ;;  %v2958_v12 = vsel %vm31_vm1, %v2433_v16, 0.0  ;;  %v2961_v42 = vsel %vm31_vm1, %v2434_v23, 0.0  ;;  %v2964_v20 = vsel %vm31_vm1, %v2437_v59, 0.0 }
  0x57   :  { %4116 = vst [vmem:[#allocation31_spill] sm:$0xff] %v2961_v42  ;;  %v593_v3 = vsel %vm291_vm8, %v562_v15, %v592_v17  ;;  %v494_v7 = vadd.f32 %v2961_v42, %v2958_v12  ;;  %v2970_v41 = vsel %vm31_vm1, %v2438_v6, 0.0  ;;  %v2973_v9 = vsel %vm31_vm1, %v2441_v56, 0.0 }
  0x58   :  { %4117 = vst [vmem:[#allocation32_spill] sm:$0xff] %v2970_v41  ;;  %v486_v16 = vrot.slane %v485_v55, 4  ;;  %v503_v23 = vadd.f32 %v2970_v41, %v2964_v20  ;;  %v2979_v59 = vsel %vm31_vm1, %v2442_v4, 0.0  ;;  %v2982_v15 = vsel %vm31_vm1, %v2445_v54, 0.0 }
  0x59   :  { %604 = vst.msk [vmem:[#allocation2 + $0x10] sm:$0xff] %vm31_vm1, %v593_v3  ;;  %v495_v61 = vrot.slane %v494_v7, 4  ;;  %v512_v6 = vadd.f32 %v2979_v59, %v2973_v9  ;;  %v2987_v18 = vsel %vm31_vm1, %v2446_v33, 0.0  ;;  %v2990_v21 = vsel %vm31_vm1, %v2449_v47, 0.0 }
  0x5a   :  { %4118 = vst [vmem:[#allocation33_spill] sm:$0xff] %v2979_v59  ;;  %v487_v56 = vadd.f32 %v486_v16, %v485_v55  ;;  %v504_v19 = vrot.slane %v503_v23, 4  ;;  %v521_v49 = vadd.f32 %v2987_v18, %v2982_v15  ;;  %v2995_v4 = vsel %vm31_vm1, %v2450_v14, 0.0 }
  0x5b   :  { %4119 = vst [vmem:[#allocation34_spill] sm:$0xff] %v2982_v15  ;;  %v496_v54 = vadd.f32 %v495_v61, %v494_v7  ;;  %v513_v17 = vrot.slane %v512_v6, 4  ;;  %v530_v3 = vadd.f32 %v2995_v4, %v2990_v21  ;;  %v3000_v59 = vsel %vm31_vm1, %v2453_v8, 0.0 }
  0x5c   :  { %4120 = vst [vmem:[#allocation35_spill] sm:$0xff] %v2987_v18  ;;  %v488_v33 = vrot.slane %v487_v56, 2  ;;  %v505_v41 = vadd.f32 %v504_v19, %v503_v23  ;;  %v522_v47 = vrot.slane %v521_v49, 4  ;;  %v3003_v55 = vsel %vm31_vm1, %v2454_v62, 0.0 }
  0x5d   :  { %4121 = vst [vmem:[#allocation36_spill] sm:$0xff] %v2990_v21  ;;  %v497_v16 = vrot.slane %v496_v54, 2  ;;  %v514_v42 = vadd.f32 %v513_v17, %v512_v6  ;;  %v531_v18 = vrot.slane %v530_v3, 4  ;;  %v539_v14 = vadd.f32 %v3003_v55, %v3000_v59 }
  0x5e   :  { %4122 = vst [vmem:[#allocation37_spill] sm:$0xff] %v2995_v4  ;;  %v489_v7 = vadd.f32 %v488_v33, %v487_v56  ;;  %v506_v61 = vrot.slane %v505_v41, 2  ;;  %v523_v15 = vadd.f32 %v522_v47, %v521_v49  ;;  %v3008_v4 = vsel %vm31_vm1, %v2457_v63, 0.0 }
  0x5f   :  { %4123 = vst [vmem:[#allocation38_spill] sm:$0xff] %v3000_v59  ;;  %v498_v21 = vadd.f32 %v497_v16, %v496_v54  ;;  %v515_v29 = vrot.slane %v514_v42, 2  ;;  %v532_v23 = vadd.f32 %v531_v18, %v530_v3  ;;  %v540_v19 = vrot.slane %v539_v14, 4 }
  0x60   :  { %4124 = vst [vmem:[#allocation39_spill] sm:$0xff] %v3003_v55  ;;  %v648_v8 = vld [vmem:[#allocation2 + $0x10] sm:$0xff]  ;;  %v490_v62 = vrot.slane %v489_v7, 1  ;;  %v507_v60 = vadd.f32 %v506_v61, %v505_v41  ;;  %v524_v6 = vrot.slane %v523_v15, 2  ;;  %v3012_v17 = vsel %vm31_vm1, %v2458_v22, 0.0 }
  0x61   :  { %2092 = vmatmul.msk.f32.gmra.mxu0 %vm31_vm1, %v648_v8  ;;  %v499_v55 = vrot.slane %v498_v21, 1  ;;  %v516_v56 = vadd.f32 %v515_v29, %v514_v42  ;;  %v533_v33 = vrot.slane %v532_v23, 2  ;;  %v541_v49 = vadd.f32 %v540_v19, %v539_v14 }
  0x62   :  { %v491_v47 = vadd.f32 %v490_v62, %v489_v7  ;;  %v508_v63 = vrot.slane %v507_v60, 1  ;;  %v525_v59 = vadd.f32 %v524_v6, %v523_v15  ;;  %v548_v54 = vadd.f32 %v3012_v17, %v3008_v4 }
  0x63   :  { %v500_v18 = vadd.f32 %v499_v55, %v498_v21  ;;  %v517_v3 = vrot.slane %v516_v56, 1  ;;  %v534_v16 = vadd.f32 %v533_v33, %v532_v23  ;;  %v542_v8 = vrot.slane %v541_v49, 2 }
  0x64   :  { %v509_v50 = vadd.f32 %v508_v63, %v507_v60  ;;  %v526_v41 = vrot.slane %v525_v59, 1  ;;  %v549_v61 = vrot.slane %v548_v54, 4  ;;  %v563_v13 = vmul.f32 0.0625, %v491_v47 }
  0x65   :  { %v518_v22 = vadd.f32 %v517_v3, %v516_v56  ;;  %v535_v46 = vrot.slane %v534_v16, 1  ;;  %v543_v44 = vadd.f32 %v542_v8, %v541_v49  ;;  %v564_v29 = vmul.f32 0.0625, %v500_v18  ;;  %v2321_v18 = vld [vmem:[%s4054_s0 + $0x70] sm:$0xff] }
  0x66   :  { %v527_v42 = vadd.f32 %v526_v41, %v525_v59  ;;  %v550_v14 = vadd.f32 %v549_v61, %v548_v54  ;;  %v565_v7 = vmul.f32 0.0625, %v509_v50  ;;  %v2558_v21 = vmov 0.0   ;;  %2288 = vmatmul.msk.bf16.gmra.mxu3 %vm31_vm1, %v2321_v18  ;;  %v4125_v61 = vld [vmem:[#allocation9_spill] sm:$0xff] }
  0x67   :  { %v536_v19 = vadd.f32 %v535_v46, %v534_v16  ;;  %v544_v15 = vrot.slane %v543_v44, 1  ;;  %v566_v62 = vmul.f32 0.0625, %v518_v22  ;;  %v594_v6 = vsel %vm279_vm2, %v564_v29, %v563_v13  ;;  %32 = vst.msk [vmem:[#allocation3] sm:$0xff] %vm31_vm1, %v2558_v21  ;;  %v4126_v22 = vld [vmem:[#allocation14_spill] sm:$0xff] }
  0x68   :  { %v551_v55 = vrot.slane %v550_v14, 2  ;;  %v567_v60 = vmul.f32 0.0625, %v527_v42  ;;  %v595_v23 = vsel %vm281_vm3, %v565_v7, %v594_v6  ;;  %v308_v56 = vadd.f32 %v2641_v27, %v2635_v25  ;;  %33 = vst.msk [vmem:[#allocation3 + $0x8] sm:$0xff] %vm31_vm1, %v2558_v21 }
  0x69   :  { %v545_v59 = vadd.f32 %v544_v15, %v543_v44  ;;  %v568_v33 = vmul.f32 0.0625, %v536_v19  ;;  %v596_v46 = vsel %vm283_vm4, %v566_v62, %v595_v23  ;;  %v610_v50 = vadd.f32 %v2843_v0, %v2837_v53  ;;  %34 = vst.msk [vmem:[#allocation3 + $0x10] sm:$0xff] %vm31_vm1, %v2558_v21  ;;  %v4132_v15 = vld [vmem:[#allocation30_spill] sm:$0xff]  ;;  %v4133_v62 = vld [vmem:[#allocation31_spill] sm:$0xff] }
  0x6a   :  { %v552_v13 = vadd.f32 %v551_v55, %v550_v14  ;;  %v597_v49 = vsel %vm285_vm5, %v567_v60, %v596_v46  ;;  %v309_v47 = vadd.f32 %v308_v56, %v2651_v31  ;;  %35 = vst.msk [vmem:[#allocation3 + $0x18] sm:$0xff] %vm31_vm1, %v2558_v21  ;;  %v315_v25 = vadd.f32 %v2644_v28, %v2638_v26  ;;  %v2306_v31 = vld [vmem:[%s4054_s0 + $0x38] sm:$0xff]  ;;  %v4134_v21 = vld [vmem:[#allocation25_spill] sm:$0xff]  ;;  %v4135_v60 = vld [vmem:[#allocation18_spill] sm:$0xff] }
  0x6b   :  { %v569_v27 = vmul.f32 0.0625, %v545_v59  ;;  %v598_v44 = vsel %vm287_vm6, %v568_v33, %v597_v49  ;;  %v611_v63 = vadd.f32 %v610_v50, %v2851_v2  ;;  %v617_v53 = vadd.f32 %v2848_v1, %v2840_v24  ;;  %2177 = vmatmul.msk.bf16.gmra.mxu2 %vm31_vm1, %v2306_v31  ;;  %v4136_v56 = vld [vmem:[#allocation34_spill] sm:$0xff]  ;;  %v4137_v46 = vld [vmem:[#allocation12_spill] sm:$0xff]  ;;  %v4142_v31 = vld [vmem:[#allocation19_spill] sm:$0xff] }
  0x6c   :  { %v553_v0 = vrot.slane %v552_v13, 1  ;;  %v310_v54 = vadd.f32 %v309_v47, %v2659_v34  ;;  %v316_v26 = vadd.f32 %v315_v25, %v2654_v32  ;;  %v322_v28 = vadd.f32 %v2747_v38, %v2740_v30  ;;  %v4139_v47 = vld [vmem:[#allocation32_spill] sm:$0xff] }
  0x6d   :  { %v599_v2 = vsel %vm289_vm7, %v569_v27, %v598_v44  ;;  %v612_v24 = vadd.f32 %v611_v63, %v2859_v57  ;;  %v618_v1 = vadd.f32 %v617_v53, %v2856_v5  ;;  %v624_v34 = vadd.f32 %v2958_v12, %v2950_v52  ;;  %v4140_v27 = vld [vmem:[#allocation20_spill] sm:$0xff]  ;;  %v4141_v63 = vld [vmem:[#allocation26_spill] sm:$0xff] }
  0x6e   :  { %v554_v3 = vadd.f32 %v553_v0, %v552_v13  ;;  %v311_v16 = vadd.f32 %v310_v54, %v2665_v36  ;;  %v317_v32 = vadd.f32 %v316_v26, %v2662_v35  ;;  %v323_v57 = vadd.f32 %v322_v28, %v2758_v45  ;;  %v4138_v13 = vld [vmem:[#allocation17_spill] sm:$0xff] }
  0x6f   :  { %v613_v30 = vadd.f32 %v612_v24, %v2871_v10  ;;  %v619_v38 = vadd.f32 %v618_v1, %v2862_v58  ;;  %v625_v5 = vadd.f32 %v624_v34, %v2964_v20  ;;  %v329_v36 = vadd.f32 %v2750_v39, %v2744_v37  ;;  %v4128_v37 = vld [vmem:[#allocation16_spill] sm:$0xff]  ;;  %v305_v6 = vld [vmem:[#allocation3 + $0x8] sm:$0xff] }
  0x70   :  { %v570_v8 = vmul.f32 0.0625, %v554_v3  ;;  %v312_v52 = vadd.f32 %v311_v16, %v2675_v43  ;;  %v318_v12 = vadd.f32 %v317_v32, %v2670_v40  ;;  %v324_v35 = vadd.f32 %v323_v57, %v2766_v48  ;;  %v304_v40 = vld [vmem:[#allocation3] sm:$0xff]  ;;  %v4130_v48 = vld [vmem:[#allocation10_spill] sm:$0xff]  ;;  %v4146_v16 = vld [vmem:[#allocation27_spill] sm:$0xff] }
  0x71   :  { %v620_v41 = vadd.f32 %v619_v38, %v2874_v11  ;;  %v626_v10 = vadd.f32 %v625_v5, %v2973_v9  ;;  %v330_v29 = vadd.f32 %v329_v36, %v4126_v22  ;;  %v4127_v43 = vld [vmem:[#allocation24_spill] sm:$0xff]  ;;  %v4129_v11 = vld [vmem:[#allocation11_spill] sm:$0xff]  ;;  %v4143_v26 = vld [vmem:[#allocation33_spill] sm:$0xff]  ;;  %vm777_vm10 = vcmask 64512  }
  0x72   :  { %v600_v58 = vsel %vm291_vm8, %v570_v8, %v599_v2  ;;  %v313_v45 = vadd.f32 %v312_v52, %v2683_v51  ;;  %v319_v20 = vadd.f32 %v318_v12, %v4125_v61  ;;  %v614_v42 = vadd.f32 %v613_v30, %v4127_v43  ;;  %v4131_v9 = vld [vmem:[#allocation15_spill] sm:$0xff]  ;;  %v4144_v2 = vld [vmem:[#allocation22_spill] sm:$0xff]  ;;  %v4145_v1 = vld [vmem:[#allocation36_spill] sm:$0xff] }
  0x73   :  { %605 = vst.msk [vmem:[#allocation2 + $0x18] sm:$0xff] %vm31_vm1, %v600_v58  ;;  %v325_v39 = vadd.f32 %v324_v35, %v4128_v37  ;;  %v331_v19 = vadd.f32 %v330_v29, %v4131_v9  ;;  %v631_v51 = vadd.f32 %v4133_v62, %v4132_v15  ;;  %v621_v55 = vadd.f32 %v620_v41, %v4134_v21  ;;  %v306_v54 = vld [vmem:[#allocation3 + $0x10] sm:$0xff]  ;;  %v4147_v30 = vld [vmem:[#allocation21_spill] sm:$0xff]  ;;  %v307_v52 = vld [vmem:[#allocation3 + $0x18] sm:$0xff] }
  0x74   :  { %v314_v14 = vadd.f32 %v313_v45, %v4129_v11  ;;  %v320_v7 = vadd.f32 %v319_v20, %v4130_v48  ;;  %v627_v59 = vadd.f32 %v626_v10, %v4136_v56  ;;  %v615_v53 = vadd.f32 %v614_v42, %v4141_v63  ;;  %v4148_v57 = vld [vmem:[#allocation35_spill] sm:$0xff]  ;;  %v4149_v12 = vld [vmem:[#allocation28_spill] sm:$0xff]  ;;  %v4151_v45 = vld [vmem:[#allocation37_spill] sm:$0xff] }
  0x75   :  { %v326_v23 = vadd.f32 %v325_v39, %v4135_v60  ;;  %v332_v49 = vadd.f32 %v331_v19, %v4138_v13  ;;  %v632_v25 = vadd.f32 %v631_v51, %v4139_v47  ;;  %v622_v32 = vadd.f32 %v621_v55, %v4146_v16  ;;  %v2307_v41 = vld [vmem:[%s4054_s0 + $0x80] sm:$0xff]  ;;  %v2322_v35 = vld [vmem:[%s4054_s0 + $0x78] sm:$0xff]  ;;  %v4152_v20 = vld [vmem:[#allocation38_spill] sm:$0xff] }
  0x76   :  { %v336_v33 = vadd.f32 %v314_v14, %v304_v40  ;;  %v321_v50 = vadd.f32 %v320_v7, %v4137_v46  ;;  %v628_v34 = vadd.f32 %v627_v59, %v4145_v1  ;;  %v616_v36 = vadd.f32 %v615_v53, %v4149_v12  ;;  %v4150_v10 = vld [vmem:[#allocation23_spill] sm:$0xff]  ;;  %v4153_v29 = vld [vmem:[#allocation29_spill] sm:$0xff]  ;;  %2289 = vmatmul.msk.bf16.gmra.mxu3 %vm31_vm1, %v2322_v35  ;;  %v3140_v13 = vld [vmem:[%s4056_s2] ss:$0 sm:$0xff] }
  0x77   :  { %v327_v44 = vadd.f32 %v326_v23, %v4140_v27  ;;  %v333_v18 = vadd.f32 %v332_v49, %v4142_v31  ;;  %v633_v28 = vadd.f32 %v632_v25, %v4143_v26  ;;  %v623_v40 = vadd.f32 %v622_v32, %v4153_v29  ;;  %v4154_v39 = vld [vmem:[#allocation39_spill] sm:$0xff]  ;;  %v2323_v55 = vld [vmem:[%s4054_s0 + $0xc0] sm:$0xff]  ;;  %v2328_v12 = vld [vmem:[%s4054_s0 + $0xe8] sm:$0xff] }
  0x78   :  { %340 = vst.msk [vmem:[#allocation3] sm:$0xff] %vm31_vm1, %v336_v33  ;;  %v337_v0 = vadd.f32 %v321_v50, %v305_v6  ;;  %v629_v22 = vadd.f32 %v628_v34, %v4152_v20  ;;  %v2309_v59 = vld [vmem:[%s4054_s0 + $0x90] sm:$0xff]  ;;  %v2324_v33 = vld [vmem:[%s4054_s0 + $0xc8] sm:$0xff]  ;;  %v2315_v49 = vld [vmem:[%s4054_s0 + $0x40] sm:$0xff]  ;;  %vm883_vm11 = vcmask 130048   ;;  %vm888_vm12 = vcmask 123904  }
  0x79   :  { %v328_v24 = vadd.f32 %v327_v44, %v4144_v2  ;;  %v334_v38 = vadd.f32 %v333_v18, %v4147_v30  ;;  %v634_v5 = vadd.f32 %v633_v28, %v4148_v57  ;;  %v2310_v27 = vld [vmem:[%s4054_s0 + $0x98] sm:$0xff]  ;;  %v2325_v44 = vld [vmem:[%s4054_s0 + $0xd0] sm:$0xff]  ;;  %v4155_v18 = vld [vmem:[#allocation13_spill] sm:$0xff] }
  0x7a   :  { %v649_v3 = vld [vmem:[#allocation2 + $0x18] sm:$0xff]  ;;  %341 = vst.msk [vmem:[#allocation3 + $0x8] sm:$0xff] %vm31_vm1, %v337_v0  ;;  %v630_v48 = vadd.f32 %v629_v22, %v3008_v4  ;;  %v2308_v4 = vld [vmem:[%s4054_s0 + $0x88] sm:$0xff]  ;;  %v2311_v2 = vld [vmem:[%s4054_s0 + $0xa0] sm:$0xff] }
  0x7b   :  { %2093 = vmatmul.msk.f32.gmra.mxu0 %vm31_vm1, %v649_v3  ;;  %v338_v8 = vadd.f32 %v328_v24, %v306_v54  ;;  %v335_v58 = vadd.f32 %v334_v38, %v4150_v10  ;;  %v635_v61 = vadd.f32 %v634_v5, %v4151_v45  ;;  %2178 = vmatmul.msk.bf16.gmra.mxu2 %vm31_vm1, %v2307_v41  ;;  %v772_v54 = vld [vmem:[%s4057_s3] sm:$0xff]  ;;  %v2316_v28 = vld [vmem:[%s4054_s0 + $0x48] sm:$0xff]  ;;  %v2326_v24 = vld [vmem:[%s4054_s0 + $0xd8] sm:$0xff] }
  0x7c   :  { %817 = vmatpush.msra.mxu1 %v772_v54  ;;  %v2317_v16 = vld [vmem:[%s4054_s0 + $0x50] sm:$0xff]  ;;  %v2312_v30 = vld [vmem:[%s4054_s0 + $0xa8] sm:$0xff]  ;;  %v2327_v38 = vld [vmem:[%s4054_s0 + $0xe0] sm:$0xff] }
  0x7d   :  { %342 = vst.msk [vmem:[#allocation3 + $0x10] sm:$0xff] %vm31_vm1, %v338_v8  ;;  %v339_v43 = vadd.f32 %v335_v58, %v307_v52  ;;  %v636_v11 = vadd.f32 %v635_v61, %v4154_v39  ;;  %v2313_v52 = vld [vmem:[%s4054_s0 + $0xb0] sm:$0xff]  ;;  %v2318_v20 = vld [vmem:[%s4054_s0 + $0x58] sm:$0xff] }
  0x7e   :  { %1066 = vmatpush.bf16.msrb.mxu1 %v4155_v18  ;;  %v2314_v22 = vld [vmem:[%s4054_s0 + $0xb8] sm:$0xff]  ;;  %v2329_v29 = vld [vmem:[%s4054_s0 + $0xf0] sm:$0xff] }
  0x7f   :  { %v606_v42 = vld [vmem:[#allocation3] sm:$0xff]  ;;  %343 = vst.msk [vmem:[#allocation3 + $0x18] sm:$0xff] %vm31_vm1, %v339_v43  ;;  %v637_v19 = vadd.f32 %v636_v11, %v3012_v17  ;;  %v2330_v11 = vld [vmem:[%s4054_s0 + $0xf8] sm:$0xff] }
  0x80   :  { %v638_v37 = vadd.f32 %v616_v36, %v606_v42 }
  0x81   :  { %v607_v14 = vld [vmem:[#allocation3 + $0x8] sm:$0xff] }
  0x82   :  { %642 = vst.msk [vmem:[#allocation3] sm:$0xff] %vm31_vm1, %v638_v37  ;;  %v639_v7 = vadd.f32 %v623_v40, %v607_v14  ;;  %v2319_v37 = vld [vmem:[%s4054_s0 + $0x60] sm:$0xff] }
  0x84   :  { %643 = vst.msk [vmem:[#allocation3 + $0x8] sm:$0xff] %vm31_vm1, %v639_v7  ;;  %v608_v9 = vld [vmem:[#allocation3 + $0x10] sm:$0xff] }
  0x85   :  { %v640_v15 = vadd.f32 %v630_v48, %v608_v9 }
  0x86   :  { %v609_v62 = vld [vmem:[#allocation3 + $0x18] sm:$0xff]  ;;  %2290 = vmatmul.msk.bf16.gmra.mxu3 %vm31_vm1, %v2323_v55 }
  0x87   :  { %644 = vst.msk [vmem:[#allocation3 + $0x10] sm:$0xff] %vm31_vm1, %v640_v15  ;;  %v641_v51 = vadd.f32 %v637_v19, %v609_v62 }
  0x89   :  { %v650_v6 = vld [vmem:[#allocation3] sm:$0xff]  ;;  %645 = vst.msk [vmem:[#allocation3 + $0x18] sm:$0xff] %vm31_vm1, %v641_v51 }
  0x8a   :  { %v654_v21 = vmul.f32 0.0625, %v650_v6 }
  0x8b   :  { %v651_v17 = vld [vmem:[#allocation3 + $0x8] sm:$0xff]  ;;  %2179 = vmatmul.msk.bf16.gmra.mxu2 %vm31_vm1, %v2308_v4 }
  0x8c   :  { %2094 = vmatmul.msk.f32.gmra.mxu0 %vm31_vm1, %v654_v21  ;;  %v655_v60 = vmul.f32 0.0625, %v651_v17 }
  0x8e   :  { %v652_v23 = vld [vmem:[#allocation3 + $0x10] sm:$0xff] }
  0x8f   :  { %v656_v56 = vmul.f32 0.0625, %v652_v23 }
  0x90   :  { %v653_v46 = vld [vmem:[#allocation3 + $0x18] sm:$0xff] }
  0x91   :  { %v657_v50 = vmul.f32 0.0625, %v653_v46 }
  0x94   :  { %2095 = vmatmul.msk.f32.gmra.mxu0 %vm31_vm1, %v655_v60 }
  0x96   :  { %2291 = vmatmul.msk.bf16.gmra.mxu3 %vm31_vm1, %v2324_v33 }
  0x9b   :  { %2180 = vmatmul.msk.bf16.gmra.mxu2 %vm31_vm1, %v2309_v59 }
  0x9c   :  { %2096 = vmatmul.msk.f32.gmra.mxu0 %vm31_vm1, %v656_v56 }
  0xa4   :  { %2097 = vmatmul.msk.f32.gmra.mxu0 %vm31_vm1, %v657_v50 }
  0xa6   :  { %2292 = vmatmul.msk.bf16.gmra.mxu3 %vm31_vm1, %v2325_v44 }
  0xa8   :  { %v708_v47 = vpop.f32.mrf.mxu0 }
  0xa9   :  { %v709_v25 = vadd.f32 %v3140_v13, %v708_v47 }
  0xab   :  { %v732_v63 = vadd.f32 3.0, %v709_v25  ;;  %2181 = vmatmul.msk.bf16.gmra.mxu2 %vm31_vm1, %v2310_v27 }
  0xac   :  { %2282 = vmatmul.msk.bf16.vlgmr.msrb.gmra.mxu0 %vm31_vm1, %v2315_v49 }
  0xad   :  { %v740_v53 = vmax.f32 %v732_v63, 0.0 }
  0xaf   :  { %v748_v0 = vmin.f32 %v740_v53, 6.0 }
  0xb1   :  { %v756_v31 = vmul.f32 0.16666667, %v748_v0 }
  0xb3   :  { %v764_v26 = vmul.f32 %v756_v31, %v709_v25 }
  0xb5   :  { %2098 = vmatmul.msk.f32.vlgmr.msra.gmra.mxu1 %vm777_vm10, %v764_v26  ;;  %v2299_v26 = vld [vmem:[%s4054_s0] sm:$0xff] }
  0xb6   :  { %2293 = vmatmul.msk.bf16.gmra.mxu3 %vm31_vm1, %v2326_v24 }
  0xbb   :  { %2182 = vmatmul.msk.bf16.gmra.mxu2 %vm31_vm1, %v2311_v2 }
  0xbc   :  { %2283 = vmatmul.msk.bf16.gmra.mxu0 %vm31_vm1, %v2316_v28  ;;  %v3230_v28 = vpop.f32.mrf.mxu2 }
  0xc4   :  { %v711_v1 = vpop.f32.mrf.mxu0  ;;  %v3232_v2 = vpop.f32.mrf.mxu2 }
  0xc5   :  { %v712_v34 = vadd.f32 %v3140_v13, %v711_v1  ;;  %v3243_v1 = vld [vmem:[%s4058_s4] ss:$0 sm:$0xff] }
  0xc6   :  { %2294 = vmatmul.msk.bf16.gmra.mxu3 %vm31_vm1, %v2327_v38 }
  0xc7   :  { %v733_v3 = vadd.f32 3.0, %v712_v34 }
  0xc9   :  { %v741_v32 = vmax.f32 %v733_v3, 0.0 }
  0xcb   :  { %v749_v57 = vmin.f32 %v741_v32, 6.0  ;;  %2183 = vmatmul.msk.bf16.gmra.mxu2 %vm31_vm1, %v2312_v30 }
  0xcc   :  { %2284 = vmatmul.msk.bf16.gmra.mxu0 %vm31_vm1, %v2317_v16  ;;  %v3246_v32 = vpop.f32.mrf.mxu2 }
  0xcd   :  { %v757_v5 = vmul.f32 0.16666667, %v749_v57  ;;  %v2301_v57 = vld [vmem:[%s4054_s0 + $0x10] sm:$0xff] }
  0xcf   :  { %v765_v8 = vmul.f32 %v757_v5, %v712_v34 }
  0xd1   :  { %2099 = vmatmul.msk.f32.gmra.mxu1 %vm777_vm10, %v765_v8 }
  0xd3   :  { %v3237_v24 = vpop.f32.mrf.mxu3 }
  0xd6   :  { %2295 = vmatmul.msk.bf16.gmra.mxu3 %vm31_vm1, %v2328_v12 }
  0xdb   :  { %2184 = vmatmul.msk.bf16.gmra.mxu2 %vm31_vm1, %v2313_v52  ;;  %v3248_v38 = vpop.f32.mrf.mxu3  ;;  %v3253_v52 = vpop.f32.mrf.mxu2 }
  0xdc   :  { %2285 = vmatmul.msk.bf16.gmra.mxu0 %vm31_vm1, %v2318_v20  ;;  %v2302_v20 = vld [vmem:[%s4054_s0 + $0x18] sm:$0xff] }
  0xde   :  { %v714_v36 = vpop.f32.mrf.mxu0 }
  0xdf   :  { %v715_v41 = vadd.f32 %v3140_v13, %v714_v36 }
  0xe1   :  { %v734_v35 = vadd.f32 3.0, %v715_v41 }
  0xe3   :  { %v742_v10 = vmax.f32 %v734_v35, 0.0 }
  0xe5   :  { %v750_v58 = vmin.f32 %v742_v10, 6.0 }
  0xe6   :  { %2296 = vmatmul.msk.bf16.gmra.mxu3 %vm31_vm1, %v2329_v29 }
  0xe7   :  { %v758_v45 = vmul.f32 0.16666667, %v750_v58 }
  0xe9   :  { %v766_v61 = vmul.f32 %v758_v45, %v715_v41  ;;  %v3257_v41 = vpop.f32.mrf.mxu3 }
  0xeb   :  { %2100 = vmatmul.msk.f32.gmra.mxu1 %vm777_vm10, %v766_v61  ;;  %2185 = vmatmul.msk.bf16.gmra.mxu2 %vm31_vm1, %v2314_v22 }
  0xec   :  { %2286 = vmatmul.msk.bf16.gmra.mxu0 %vm31_vm1, %v2319_v37 }
  0xee   :  { %v3260_v45 = vpop.f32.mrf.mxu2 }
  0xf1   :  { %v3262_v61 = vpop.f32.mrf.mxu3 }
  0xf6   :  { %2297 = vmatmul.msk.bf16.gmra.mxu3 %vm31_vm1, %v2330_v11 }
  0xf8   :  { %v717_v40 = vpop.f32.mrf.mxu0 }
  0xf9   :  { %v718_v43 = vadd.f32 %v3140_v13, %v717_v40  ;;  %v3271_v11 = vpop.f32.mrf.mxu3 }
  0xfb   :  { %v735_v42 = vadd.f32 3.0, %v718_v43 }
  0xfd   :  { %v743_v39 = vmax.f32 %v735_v42, 0.0  ;;  %v3269_v42 = vpop.f32.mrf.mxu2 }
  0xff   :  { %v751_v14 = vmin.f32 %v743_v39, 6.0 }
 0x101   :  { %v759_v48 = vmul.f32 0.16666667, %v751_v14 }
 0x103   :  { %v767_v7 = vmul.f32 %v759_v48, %v718_v43  ;;  %v2303_v48 = vld [vmem:[%s4054_s0 + $0x20] sm:$0xff] }
 0x105   :  { %2101 = vmatmul.msk.f32.gmra.mxu1 %vm777_vm10, %v767_v7 }
 0x109   :  { %v720_v9 = vpop.f32.mrf.mxu0 }
 0x10a   :  { %v721_v19 = vadd.f32 %v3140_v13, %v720_v9  ;;  %v3277_v9 = vpop.f32.mrf.mxu2 }
 0x10c   :  { %v736_v15 = vadd.f32 3.0, %v721_v19 }
 0x10e   :  { %v744_v62 = vmax.f32 %v736_v15, 0.0 }
 0x110   :  { %v752_v51 = vmin.f32 %v744_v62, 6.0 }
 0x111   :  { %v723_v6 = vpop.f32.mrf.mxu0 }
 0x112   :  { %v760_v21 = vmul.f32 0.16666667, %v752_v51  ;;  %v724_v4 = vadd.f32 %v3140_v13, %v723_v6  ;;  %v3282_v51 = vpop.f32.mrf.mxu2 }
 0x114   :  { %v768_v55 = vmul.f32 %v760_v21, %v721_v19  ;;  %v737_v17 = vadd.f32 3.0, %v724_v4  ;;  %v3279_v19 = vpop.f32.mrf.mxu3 }
 0x116   :  { %v745_v60 = vmax.f32 %v737_v17, 0.0  ;;  %2102 = vmatmul.msk.f32.gmra.mxu1 %vm777_vm10, %v768_v55 }
 0x118   :  { %v753_v23 = vmin.f32 %v745_v60, 6.0 }
 0x119   :  { %v726_v56 = vpop.f32.mrf.mxu0 }
 0x11a   :  { %v761_v59 = vmul.f32 0.16666667, %v753_v23  ;;  %v727_v33 = vadd.f32 %v3140_v13, %v726_v56  ;;  %v3288_v17 = vpop.f32.mrf.mxu2 }
 0x11c   :  { %v769_v46 = vmul.f32 %v761_v59, %v724_v4  ;;  %v738_v50 = vadd.f32 3.0, %v727_v33  ;;  %v3285_v6 = vpop.f32.mrf.mxu3 }
 0x11e   :  { %v746_v49 = vmax.f32 %v738_v50, 0.0  ;;  %2103 = vmatmul.msk.f32.gmra.mxu1 %vm777_vm10, %v769_v46 }
 0x120   :  { %v754_v47 = vmin.f32 %v746_v49, 6.0 }
 0x121   :  { %v729_v25 = vpop.f32.mrf.mxu0 }
 0x122   :  { %v762_v27 = vmul.f32 0.16666667, %v754_v47  ;;  %v730_v44 = vadd.f32 %v3140_v13, %v729_v25  ;;  %v2300_v13 = vld [vmem:[%s4054_s0 + $0x8] sm:$0xff]  ;;  %s2559_s0 = smov 112  }
 0x124   :  { %v770_v63 = vmul.f32 %v762_v27, %v727_v33  ;;  %v739_v53 = vadd.f32 3.0, %v730_v44  ;;  %v3290_v23 = vpop.f32.mrf.mxu3  ;;  %v3292_v33 = vpop.f32.mrf.mxu2 }
 0x126   :  { %v747_v0 = vmax.f32 %v739_v53, 0.0  ;;  %2104 = vmatmul.msk.f32.gmra.mxu1 %vm777_vm10, %v770_v63 }
 0x128   :  { %v755_v54 = vmin.f32 %v747_v0, 6.0 }
 0x12a   :  { %v763_v31 = vmul.f32 0.16666667, %v755_v54 }
 0x12c   :  { %v771_v18 = vmul.f32 %v763_v31, %v730_v44  ;;  %v3294_v50 = vpop.f32.mrf.mxu3  ;;  %v3298_v63 = vpop.f32.mrf.mxu2 }
 0x12e   :  { %2105 = vmatmul.msk.f32.gmra.mxu1 %vm777_vm10, %v771_v18 }
 0x132   :  { %v819_v34 = vpop.f32.mrf.mxu1 }
 0x133   :  { %v820_v3 = vadd.f32 %v3243_v1, %v819_v34 }
 0x134   :  { %v3301_v0 = vpop.f32.mrf.mxu3  ;;  %v3303_v34 = vpop.f32.mrf.mxu2 }
 0x135   :  { %v843_v16 = vsub.f32 0.0, %v820_v3 }
 0x136   :  { %2170 = vmatmul.msk.bf16.vlgmr.msrb.gmra.mxu1 %vm31_vm1, %v2299_v26 }
 0x137   :  { %v851_v30 = vmul.f32 1.442695, %v843_v16 }
 0x139   :  { %2500 = vpow2.f32 %v851_v30 }
 0x13c   :  { %v3305_v3 = vpop.f32.mrf.mxu3 }
 0x13f   :  { %v2501_v5 = vpop.eup %2500 }
 0x140   :  { %v867_v8 = vadd.f32 1.0, %v2501_v5 }
 0x142   :  { %2502 = vrcp.f32 %v867_v8 }
 0x146   :  { %2171 = vmatmul.msk.bf16.gmra.mxu1 %vm31_vm1, %v2300_v13 }
 0x148   :  { %v2503_v58 = vpop.eup %2502 }
 0x149   :  { %884 = vst.msk [vmem:[#allocation4] sm:$0xff] %vm883_vm11, %v2503_v58  ;;  %v3310_v58 = vpop.f32.mrf.mxu2 }
 0x14e   :  { %v822_v12 = vpop.f32.mrf.mxu1 }
 0x14f   :  { %v823_v36 = vadd.f32 %v3243_v1, %v822_v12 }
 0x151   :  { %v844_v35 = vsub.f32 0.0, %v823_v36 }
 0x153   :  { %v853_v10 = vmul.f32 1.442695, %v844_v35 }
 0x155   :  { %2504 = vpow2.f32 %v853_v10 }
 0x156   :  { %2172 = vmatmul.msk.bf16.gmra.mxu1 %vm31_vm1, %v2301_v57 }
 0x15b   :  { %v2505_v22 = vpop.eup %2504 }
 0x15c   :  { %v868_v29 = vadd.f32 1.0, %v2505_v22  ;;  %v3312_v22 = vpop.f32.mrf.mxu3 }
 0x15e   :  { %2506 = vrcp.f32 %v868_v29 }
 0x164   :  { %v2507_v39 = vpop.eup %2506 }
 0x165   :  { %885 = vst.msk [vmem:[#allocation4 + $0x8] sm:$0xff] %vm883_vm11, %v2507_v39  ;;  %v3314_v39 = vpop.f32.mrf.mxu0 }
 0x166   :  { %2173 = vmatmul.msk.bf16.gmra.mxu1 %vm31_vm1, %v2302_v20 }
 0x168   :  { %v825_v40 = vpop.f32.mrf.mxu1 }
 0x169   :  { %v826_v43 = vadd.f32 %v3243_v1, %v825_v40 }
 0x16b   :  { %v845_v37 = vsub.f32 0.0, %v826_v43 }
 0x16d   :  { %v855_v14 = vmul.f32 1.442695, %v845_v37 }
 0x16f   :  { %2508 = vpow2.f32 %v855_v14 }
 0x175   :  { %v2509_v7 = vpop.eup %2508 }
 0x176   :  { %2174 = vmatmul.msk.bf16.gmra.mxu1 %vm31_vm1, %v2303_v48  ;;  %v869_v15 = vadd.f32 1.0, %v2509_v7  ;;  %v3317_v48 = vpop.f32.mrf.mxu3 }
 0x178   :  { %2510 = vrcp.f32 %v869_v15  ;;  %v1638_v15 = vpop.f32.mrf.mxu0 }
 0x17e   :  { %v2511_v62 = vpop.eup %2510 }
 0x17f   :  { %886 = vst.msk [vmem:[#allocation4 + $0x10] sm:$0xff] %vm883_vm11, %v2511_v62 }
 0x182   :  { %v828_v21 = vpop.f32.mrf.mxu1 }
 0x183   :  { %v829_v4 = vadd.f32 %v3243_v1, %v828_v21 }
 0x185   :  { %v846_v55 = vsub.f32 0.0, %v829_v4 }
 0x187   :  { %v857_v60 = vmul.f32 1.442695, %v846_v55  ;;  %v1693_v55 = vpop.f32.mrf.mxu3 }
 0x189   :  { %2512 = vpow2.f32 %v857_v60  ;;  %v1641_v60 = vpop.f32.mrf.mxu0 }
 0x18f   :  { %v2513_v56 = vpop.eup %2512 }
 0x190   :  { %v870_v59 = vadd.f32 1.0, %v2513_v56 }
 0x192   :  { %2514 = vrcp.f32 %v870_v59 }
 0x193   :  { %v831_v46 = vpop.f32.mrf.mxu1 }
 0x194   :  { %v832_v49 = vadd.f32 %v3243_v1, %v831_v46  ;;  %v3325_v46 = vpop.f32.mrf.mxu3 }
 0x196   :  { %v847_v47 = vsub.f32 0.0, %v832_v49  ;;  %v1643_v49 = vpop.f32.mrf.mxu0 }
 0x198   :  { %v859_v25 = vmul.f32 1.442695, %v847_v47  ;;  %v2515_v27 = vpop.eup %2514 }
 0x199   :  { %887 = vst.msk [vmem:[#allocation4 + $0x18] sm:$0xff] %vm883_vm11, %v2515_v27 }
 0x19a   :  { %2516 = vpow2.f32 %v859_v25 }
 0x19b   :  { %v834_v44 = vpop.f32.mrf.mxu1 }
 0x19c   :  { %v835_v53 = vadd.f32 %v3243_v1, %v834_v44  ;;  %v3329_v27 = vpop.f32.mrf.mxu3  ;;  %v2014_v44 = vld [vmem:[%s4059_s5 + $0x8] sm:$0xff] }
 0x19d   :  { %2032 = vmatpush.msra.mxu0 %v2014_v44 }
 0x19e   :  { %v848_v31 = vsub.f32 0.0, %v835_v53  ;;  %v1646_v53 = vpop.f32.mrf.mxu0 }
 0x1a0   :  { %v2517_v54 = vpop.eup %2516  ;;  %v861_v13 = vmul.f32 1.442695, %v848_v31 }
 0x1a1   :  { %v871_v18 = vadd.f32 1.0, %v2517_v54 }
 0x1a3   :  { %2518 = vrcp.f32 %v871_v18  ;;  %v837_v26 = vpop.f32.mrf.mxu1 }
 0x1a4   :  { %2520 = vpow2.f32 %v861_v13  ;;  %v838_v30 = vadd.f32 %v3243_v1, %v837_v26  ;;  %v3336_v18 = vpop.f32.mrf.mxu3 }
 0x1a6   :  { %v849_v57 = vsub.f32 0.0, %v838_v30  ;;  %v3338_v26 = vpop.f32.mrf.mxu0 }
 0x1a8   :  { %v863_v12 = vmul.f32 1.442695, %v849_v57  ;;  %v3347_v57 = vld [vmem:[%s4061_s7] ss:$0 sm:$0xff] }
 0x1a9   :  { %v2519_v16 = vpop.eup %2518 }
 0x1aa   :  { %1234 = vrot.lane.b32.xlu0 %v2519_v16, %s2559_s0  ;;  %v2521_v36 = vpop.eup %2520  ;;  %2522 = vpow2.f32 %v863_v12  ;;  %v3358_v12 = vadd.f32 %v3347_v57, %v3230_v28 }
 0x1ab   :  { %v840_v5 = vpop.f32.mrf.mxu1  ;;  %v872_v10 = vadd.f32 1.0, %v2521_v36  ;;  %v3362_v36 = vadd.f32 %v3347_v57, %v3232_v2  ;;  %v3382_v2 = vadd.f32 %v3347_v57, %v3260_v45 }
 0x1ac   :  { %v841_v8 = vadd.f32 %v3243_v1, %v840_v5  ;;  %v1125_v1 = vpop.f32.mrf.mxu2  ;;  %v3342_v30 = vpop.f32.mrf.mxu3  ;;  %v3352_v5 = vld [vmem:[%s4061_s7] ss:$0 sm:$0xff] }
 0x1ad   :  { %2524 = vrcp.f32 %v872_v10  ;;  %v3370_v10 = vadd.f32 %v3352_v5, %v3237_v24  ;;  %v3378_v28 = vadd.f32 %v3352_v5, %v3248_v38  ;;  %v3392_v24 = vadd.f32 %v3347_v57, %v3269_v42 }
 0x1ae   :  { %v850_v35 = vsub.f32 0.0, %v841_v8  ;;  %v3354_v8 = vpop.f32.mrf.mxu0  ;;  %v1109_v38 = vadd.f32 %v3347_v57, %v3277_v9  ;;  %v3404_v45 = vadd.f32 %v3352_v5, %v3271_v11  ;;  %v3410_v42 = vadd.f32 %v3352_v5, %v3279_v19 }
 0x1af   :  { %v3420_v9 = vadd.f32 %v3352_v5, %v3285_v6  ;;  %v1116_v11 = vadd.f32 %v3347_v57, %v3292_v33  ;;  %v1119_v19 = vadd.f32 %v3347_v57, %v3298_v63  ;;  %v3438_v6 = vadd.f32 %v3352_v5, %v3301_v0 }
 0x1b0   :  { %v865_v20 = vmul.f32 1.442695, %v850_v35  ;;  %v2523_v29 = vpop.eup %2522  ;;  %v3366_v35 = vadd.f32 %v3347_v57, %v3246_v32  ;;  %v3388_v32 = vadd.f32 %v3352_v5, %v3257_v41  ;;  %v1111_v41 = vadd.f32 %v3347_v57, %v3282_v51 }
 0x1b1   :  { %v873_v40 = vadd.f32 1.0, %v2523_v29  ;;  %v3426_v51 = vadd.f32 %v3352_v5, %v3290_v23  ;;  %4161 = vst [vmem:[#allocation10_spill] sm:$0xff] %v3438_v6  ;;  %v1124_v33 = vadd.f32 %v3347_v57, %v3310_v58  ;;  %v3444_v23 = vadd.f32 %v3352_v5, %v3305_v3 }
 0x1b2   :  { %2526 = vpow2.f32 %v865_v20  ;;  %v3374_v20 = vadd.f32 %v3347_v57, %v3253_v52  ;;  %v3396_v52 = vadd.f32 %v3352_v5, %v3262_v61  ;;  %v1114_v61 = vadd.f32 %v3347_v57, %v3288_v17 }
 0x1b3   :  { %v2525_v43 = vpop.eup %2524  ;;  %2528 = vrcp.f32 %v873_v40  ;;  %v3320_v4 = vpop.f32.mrf.mxu1  ;;  %v3432_v17 = vadd.f32 %v3352_v5, %v3294_v50  ;;  %4162 = vst [vmem:[#allocation15_spill] sm:$0xff] %v3444_v23  ;;  %v1126_v63 = vadd.f32 %v3347_v57, %v1125_v1  ;;  %v3449_v50 = vadd.f32 %v3352_v5, %v3314_v39 }
 0x1b4   :  { %1236 = vrot.lane.b32.xlu0 %v2525_v43, %s2559_s0  ;;  %v1128_v21 = vpop.f32.mrf.mxu2  ;;  %v3414_v43 = vld [vmem:[#allocation4 + $0x8] sm:$0xff]  ;;  %v3458_v58 = vadd.f32 %v3352_v5, %v1638_v15  ;;  %v3463_v1 = vadd.f32 %v3352_v5, %v3317_v48 }
 0x1b5   :  { %v1129_v0 = vadd.f32 %v3347_v57, %v1128_v21  ;;  %v1160_v3 = vrot.slane %v3414_v43, 2  ;;  %v1161_v44 = vrot.slane %v3414_v43, 3  ;;  %v1162_v21 = vrot.slane %v3414_v43, 4 }
 0x1b6   :  { %4164 = vst [vmem:[#allocation31_spill] sm:$0xff] %v3463_v1  ;;  %v1163_v15 = vrot.slane %v3414_v43, 5  ;;  %v3488_v1 = vadd.f32 %v3352_v5, %v1646_v53  ;;  %v1165_v23 = vrot.slane %v3414_v43, 7 }
 0x1b7   :  { %v1178_v53 = vperm.slane %v1162_v21, 0 }
 0x1b8   :  { %v2527_v37 = vpop.eup %2526 }
 0x1b9   :  { %v874_v14 = vadd.f32 1.0, %v2527_v37  ;;  %v2529_v7 = vpop.eup %2528  ;;  %v3416_v37 = vpop.f32.mrf.mxu3 }
 0x1ba   :  { %1238 = vrot.lane.b32.xlu1 %v2529_v7, %s2559_s0  ;;  %v1159_v7 = vrot.slane %v3414_v43, 1 }
 0x1bb   :  { %2530 = vrcp.f32 %v874_v14  ;;  %v3323_v59 = vpop.f32.mrf.mxu1  ;;  %v1121_v14 = vadd.f32 %v3347_v57, %v3303_v34  ;;  %v3454_v34 = vadd.f32 %v3352_v5, %v3312_v22  ;;  %v3471_v22 = vadd.f32 %v3352_v5, %v1693_v55 }
 0x1bc   :  { %v1130_v56 = vpop.f32.mrf.mxu2  ;;  %4156 = vst [vmem:[#allocation9_spill] sm:$0xff] %v3323_v59  ;;  %v1175_v59 = vperm.slane %v1159_v7, 0  ;;  %v3500_v7 = vld [vmem:[#allocation4] sm:$0xff] }
 0x1bd   :  { %4163 = vst [vmem:[#allocation30_spill] sm:$0xff] %v3454_v34  ;;  %v1131_v39 = vadd.f32 %v3347_v57, %v1130_v56  ;;  %v3480_v56 = vadd.f32 %v3352_v5, %v1643_v49  ;;  %v3492_v34 = vadd.f32 %v3352_v5, %v3329_v27  ;;  %v3508_v27 = vadd.f32 %v3352_v5, %v3336_v18 }
 0x1be   :  { %4165 = vst [vmem:[#allocation25_spill] sm:$0xff] %v3471_v22  ;;  %v1176_v22 = vperm.slane %v1160_v3, 0  ;;  %v1179_v3 = vperm.slane %v1163_v15, 0  ;;  %v1157_v15 = vrot.slane %v3500_v7, 6 }
 0x1bf   :  { %4167 = vst [vmem:[#allocation34_spill] sm:$0xff] %v3492_v34  ;;  %v3514_v34 = vmul.f32 %v1175_v59, %v1114_v61  ;;  %v3533_v61 = vmul.f32 %v1178_v53, %v1131_v39 }
 0x1c0   :  { %v3519_v6 = vmul.f32 %v1176_v22, %v1119_v19  ;;  %v3521_v21 = vmul.f32 %v1176_v22, %v1121_v14  ;;  %v1717_v14 = vld [vmem:[#allocation4 + $0x10] sm:$0xff]  ;;  %v1181_v22 = vperm.slane %v1165_v23, 0  ;;  %v1153_v23 = vrot.slane %v3500_v7, 2 }
 0x1c1   :  { %v2531_v62 = vpop.eup %2530  ;;  %4176 = vst [vmem:[#allocation36_spill] sm:$0xff] %v3533_v61  ;;  %v1154_v61 = vrot.slane %v3500_v7, 3 }
 0x1c2   :  { %1240 = vrot.lane.b32.xlu1 %v2531_v62, %s2559_s0  ;;  %v3467_v62 = vadd.f32 %v3352_v5, %v1641_v60  ;;  %v3484_v60 = vadd.f32 %v3352_v5, %v3325_v46  ;;  %v3498_v46 = vadd.f32 %v3352_v5, %v3338_v26  ;;  %v3516_v26 = vmul.f32 %v1175_v59, %v1116_v11 }
 0x1c3   :  { %v3327_v25 = vpop.f32.mrf.mxu1  ;;  %4171 = vst [vmem:[#allocation20_spill] sm:$0xff] %v3519_v6  ;;  %v3531_v59 = vmul.f32 %v1178_v53, %v1129_v0  ;;  %v1158_v11 = vrot.slane %v3500_v7, 7  ;;  %v1721_v53 = vrot.slane %v1717_v14, 1 }
 0x1c4   :  { %v1133_v47 = vpop.f32.mrf.mxu2  ;;  %4157 = vst [vmem:[#allocation14_spill] sm:$0xff] %v3327_v25  ;;  %v1164_v25 = vrot.slane %v3414_v43, 6 }
 0x1c5   :  { %v1134_v48 = vadd.f32 %v3347_v57, %v1133_v47  ;;  %4166 = vst [vmem:[#allocation18_spill] sm:$0xff] %v3484_v60  ;;  %v1177_v47 = vperm.slane %v1161_v44, 0  ;;  %v3510_v44 = vpop.f32.mrf.mxu3 }
 0x1c6   :  { %4170 = vst [vmem:[#allocation32_spill] sm:$0xff] %v3516_v26 }
 0x1c7   :  { %4172 = vst [vmem:[#allocation26_spill] sm:$0xff] %v3521_v21  ;;  %v3525_v18 = vmul.f32 %v1177_v47, %v1124_v33 }
 0x1c8   :  { %4175 = vst [vmem:[#allocation22_spill] sm:$0xff] %v3531_v59 }
 0x1c9   :  { %4173 = vst [vmem:[#allocation19_spill] sm:$0xff] %v3525_v18  ;;  %v3587_v18 = vld [vmem:[#allocation4 + $0x18] sm:$0xff] }
 0x1cb   :  { %v3334_v31 = vpop.f32.mrf.mxu1 }
 0x1cc   :  { %v1135_v54 = vpop.f32.mrf.mxu2  ;;  %4158 = vst [vmem:[#allocation24_spill] sm:$0xff] %v3334_v31  ;;  %v3476_v31 = vpop.f32.mrf.mxu0 }
 0x1cd   :  { %v1136_v55 = vadd.f32 %v3347_v57, %v1135_v54 }
 0x1cf   :  { %v3538_v19 = vmul.f32 %v1179_v3, %v1136_v55 }
 0x1d1   :  { %4178 = vst [vmem:[#allocation21_spill] sm:$0xff] %v3538_v19 }
 0x1d3   :  { %v3340_v16 = vpop.f32.mrf.mxu1 }
 0x1d4   :  { %v1138_v13 = vpop.f32.mrf.mxu2  ;;  %4159 = vst [vmem:[#allocation16_spill] sm:$0xff] %v3340_v16  ;;  %v1656_v0 = vpop.f32.mrf.mxu0 }
 0x1d5   :  { %v1139_v49 = vadd.f32 %v3347_v57, %v1138_v13 }
 0x1db   :  { %v3400_v40 = vpop.f32.mrf.mxu1 }
 0x1dc   :  { %v3384_v29 = vpop.f32.mrf.mxu2  ;;  %4160 = vst [vmem:[#allocation11_spill] sm:$0xff] %v3400_v40  ;;  %v1174_v40 = vperm.slane %v3414_v43, 0  ;;  %v3535_v43 = vmul.f32 %v1179_v3, %v1134_v48  ;;  %v1172_v48 = vperm.slane %v1157_v15, 0  ;;  %v1722_v3 = vrot.slane %v1717_v14, 2 }
 0x1dd   :  { %v1726_v15 = vrot.slane %v1717_v14, 6 }
 0x1de   :  { %v3504_v60 = vmul.f32 %v1174_v40, %v1109_v38  ;;  %v3512_v13 = vmul.f32 %v1174_v40, %v1111_v41  ;;  %v1156_v38 = vrot.slane %v3500_v7, 5  ;;  %v1180_v40 = vperm.slane %v1164_v25, 0  ;;  %4177 = vst [vmem:[#allocation27_spill] sm:$0xff] %v3535_v43 }
 0x1df   :  { %v1141_v41 = vadd.f32 %v3347_v57, %v3384_v29  ;;  %v3544_v25 = vadd.f32 %v3352_v5, %v3354_v8  ;;  %v3548_v29 = vadd.f32 %v3352_v5, %v3342_v30  ;;  %v1173_v8 = vperm.slane %v1158_v11, 0 }
 0x1e0   :  { %4168 = vst [vmem:[#allocation12_spill] sm:$0xff] %v3504_v60  ;;  %v3527_v60 = vmul.f32 %v1177_v47, %v1126_v63  ;;  %v1152_v63 = vrot.slane %v3500_v7, 1  ;;  %v1171_v39 = vperm.slane %v1156_v38, 0  ;;  %v3550_v47 = vmul.f32 %v1180_v40, %v1139_v49 }
 0x1e1   :  { %4169 = vst [vmem:[#allocation17_spill] sm:$0xff] %v3512_v13  ;;  %v3552_v55 = vmul.f32 %v1180_v40, %v1141_v41  ;;  %v1155_v49 = vrot.slane %v3500_v7, 4  ;;  %v1711_v40 = vpop.f32.mrf.mxu3  ;;  %v3571_v11 = vmul.f32 %v1172_v48, %v3366_v35  ;;  %v3575_v26 = vmul.f32 %v1172_v48, %v3374_v20 }
 0x1e2   :  { %4174 = vst [vmem:[#allocation33_spill] sm:$0xff] %v3527_v60  ;;  %v1725_v60 = vrot.slane %v1717_v14, 5  ;;  %v3559_v21 = vperm.slane %v1152_v63, 0  ;;  %v3565_v41 = vmul.f32 %v1171_v39, %v3358_v12  ;;  %v1736_v13 = vperm.slane %v1721_v53, 0 }
 0x1e3   :  { %v3502_v54 = vpop.f32.mrf.mxu1  ;;  %4179 = vst [vmem:[#allocation35_spill] sm:$0xff] %v3550_v47  ;;  %v3578_v47 = vmul.f32 %v1173_v8, %v3382_v2  ;;  %v3581_v12 = vmul.f32 %v1173_v8, %v3392_v24  ;;  %v3583_v43 = vperm.slane %v1153_v23, 0  ;;  %v3585_v35 = vperm.slane %v1154_v61, 0 }
 0x1e4   :  { %v1143_v16 = vpop.f32.mrf.mxu2  ;;  %4180 = vst [vmem:[#allocation28_spill] sm:$0xff] %v3552_v55  ;;  %v1727_v55 = vrot.slane %v1717_v14, 7  ;;  %v1741_v59 = vperm.slane %v1726_v15, 0  ;;  %v1654_v20 = vadd.f32 %v3352_v5, %v3476_v31  ;;  %v3591_v48 = vperm.slane %v1155_v49, 0 }
 0x1e5   :  { %v1144_v33 = vadd.f32 %v3347_v57, %v1143_v16  ;;  %v3568_v16 = vmul.f32 %v1171_v39, %v3362_v36  ;;  %v1740_v36 = vperm.slane %v1725_v60, 0  ;;  %v1723_v39 = vrot.slane %v1717_v14, 3 }
 0x1e6   :  { %v1742_v2 = vperm.slane %v1727_v55, 0  ;;  %v3602_v61 = vmul.f32 %v1736_v13, %v3467_v62  ;;  %v3605_v23 = vmul.f32 %v1736_v13, %v3480_v56  ;;  %v1658_v55 = vpop.f32.mrf.mxu0  ;;  %v1728_v62 = vrot.slane %v3587_v18, 1 }
 0x1e7   :  { %v3557_v30 = vmul.f32 %v1181_v22, %v1144_v33  ;;  %v1735_v33 = vperm.slane %v1717_v14, 0  ;;  %v1729_v56 = vrot.slane %v3587_v18, 2  ;;  %v1659_v8 = vadd.f32 %v3352_v5, %v1658_v55 }
 0x1e8   :  { %v3634_v49 = vmul.f32 %v1742_v2, %v3410_v42  ;;  %v1732_v15 = vrot.slane %v3587_v18, 5 }
 0x1e9   :  { %4181 = vst [vmem:[#allocation23_spill] sm:$0xff] %v3557_v30  ;;  %v1737_v30 = vperm.slane %v1722_v3, 0  ;;  %v3594_v53 = vmul.f32 %v1735_v33, %v3449_v50  ;;  %v3597_v24 = vmul.f32 %v1735_v33, %v3458_v58  ;;  %v3614_v50 = vmul.f32 %v1740_v36, %v3370_v10  ;;  %v1713_v33 = vpop.f32.mrf.mxu3 }
 0x1ea   :  { %v3617_v58 = vmul.f32 %v1740_v36, %v3378_v28  ;;  %v3621_v3 = vmul.f32 %v1741_v59, %v3388_v32  ;;  %v3629_v10 = vmul.f32 %v1742_v2, %v3404_v45  ;;  %v1730_v28 = vrot.slane %v3587_v18, 3 }
 0x1eb   :  { %v3561_v38 = vpop.f32.mrf.mxu1  ;;  %v3608_v31 = vmul.f32 %v1737_v30, %v3488_v1  ;;  %v1657_v1 = vadd.f32 %v3352_v5, %v1656_v0  ;;  %v1731_v32 = vrot.slane %v3587_v18, 4  ;;  %v1743_v0 = vperm.slane %v3587_v18, 0 }
 0x1ec   :  { %v1145_v19 = vpop.f32.mrf.mxu2  ;;  %v1744_v45 = vperm.slane %v1728_v62, 0  ;;  %v1745_v36 = vperm.slane %v1729_v56, 0  ;;  %v1746_v2 = vperm.slane %v1730_v28, 0  ;;  %v1714_v62 = vadd.f32 %v3352_v5, %v1713_v33  ;;  %v4193_v33 = vld [vmem:[#allocation25_spill] sm:$0xff] }
 0x1ed   :  { %v1146_v63 = vadd.f32 %v3347_v57, %v1145_v19  ;;  %v1724_v19 = vrot.slane %v1717_v14, 4  ;;  %v3611_v14 = vmul.f32 %v1737_v30, %v3498_v46  ;;  %v3626_v46 = vmul.f32 %v1741_v59, %v3396_v52 }
 0x1ee   :  { %v1707_v59 = vadd.f32 %v3352_v5, %v3416_v37  ;;  %v1748_v6 = vperm.slane %v1732_v15, 0  ;;  %v3656_v37 = vmul.f32 %v1743_v0, %v3420_v9  ;;  %v4188_v9 = vld [vmem:[#allocation14_spill] sm:$0xff] }
 0x1ef   :  { %v3599_v60 = vmul.f32 %v1181_v22, %v1146_v63  ;;  %v1738_v22 = vperm.slane %v1723_v39, 0  ;;  %v1739_v13 = vperm.slane %v1724_v19, 0  ;;  %v1733_v63 = vrot.slane %v3587_v18, 6 }
 0x1f0   :  { %v1709_v19 = vadd.f32 %v3352_v5, %v3510_v44  ;;  %4183 = vst [vmem:[#allocation38_spill] sm:$0xff] %v3656_v37  ;;  %v1734_v44 = vrot.slane %v3587_v18, 7 }
 0x1f1   :  { %4182 = vst [vmem:[#allocation37_spill] sm:$0xff] %v3599_v60  ;;  %v3640_v52 = vmul.f32 %v1738_v22, %v3544_v25  ;;  %v3645_v39 = vmul.f32 %v1738_v22, %v1654_v20  ;;  %v3647_v42 = vmul.f32 %v1739_v13, %v1657_v1  ;;  %v3651_v55 = vmul.f32 %v1739_v13, %v1659_v8 }
 0x1f2   :  { %v1712_v25 = vadd.f32 %v3352_v5, %v1711_v40  ;;  %v1747_v60 = vperm.slane %v1731_v32, 0  ;;  %v3659_v20 = vmul.f32 %v1743_v0, %v3426_v51  ;;  %v3662_v22 = vmul.f32 %v1744_v45, %v3432_v17  ;;  %v4185_v40 = vld [vmem:[#allocation10_spill] sm:$0xff]  ;;  %v4186_v5 = vld [vmem:[#allocation15_spill] sm:$0xff]  ;;  %v4189_v51 = vld [vmem:[#allocation16_spill] sm:$0xff] }
 0x1f3   :  { %v1088_v30 = vpop.f32.mrf.mxu1  ;;  %v1749_v56 = vperm.slane %v1733_v63, 0  ;;  %v1069_v1 = vadd.f32 %v3347_v57, %v3320_v4  ;;  %v3668_v13 = vmul.f32 %v1744_v45, %v4185_v40  ;;  %v3671_v28 = vmul.f32 %v1745_v36, %v4186_v5  ;;  %v4190_v17 = vld [vmem:[#allocation30_spill] sm:$0xff]  ;;  %v4191_v0 = vld [vmem:[#allocation31_spill] sm:$0xff] }
 0x1f4   :  { %4184 = vst [vmem:[#allocation29_spill] sm:$0xff] %v3662_v22  ;;  %v1074_v8 = vadd.f32 %v3347_v57, %v4188_v9  ;;  %v1079_v32 = vadd.f32 %v3347_v57, %v4189_v51  ;;  %v3678_v15 = vmul.f32 %v1745_v36, %v4190_v17  ;;  %v3681_v18 = vmul.f32 %v1746_v2, %v4191_v0  ;;  %v4194_v63 = vld [vmem:[#allocation18_spill] sm:$0xff] }
 0x1f5   :  { %4187 = vst [vmem:[#allocation39_spill] sm:$0xff] %v3671_v28  ;;  %v3684_v4 = vmul.f32 %v1746_v2, %v4193_v33  ;;  %v1084_v45 = vadd.f32 %v3347_v57, %v3502_v54  ;;  %v3689_v40 = vmul.f32 %v1747_v60, %v4194_v63  ;;  %v4196_v5 = vld [vmem:[#allocation34_spill] sm:$0xff]  ;;  %v3695_v51 = vmul.f32 %v1748_v6, %v3508_v27  ;;  %v4200_v63 = vld [vmem:[#allocation9_spill] sm:$0xff] }
 0x1f6   :  { %4192 = vst [vmem:[#allocation13_spill] sm:$0xff] %v3681_v18  ;;  %v3692_v9 = vmul.f32 %v1747_v60, %v4196_v5  ;;  %v1089_v36 = vadd.f32 %v3347_v57, %v1088_v30  ;;  %v3699_v17 = vmul.f32 %v1748_v6, %v3548_v29  ;;  %v3701_v0 = vmul.f32 %v1749_v56, %v1707_v59  ;;  %v4201_v5 = vld [vmem:[#allocation24_spill] sm:$0xff]  ;;  %v4202_v6 = vld [vmem:[#allocation11_spill] sm:$0xff] }
 0x1f7   :  { %4195 = vst [vmem:[#allocation10_spill] sm:$0xff] %v3689_v40  ;;  %v1750_v2 = vperm.slane %v1734_v44, 0  ;;  %v4199_v33 = vperm.slane %v3500_v7, 0  ;;  %v1071_v40 = vadd.f32 %v3347_v57, %v4200_v63  ;;  %v1200_v60 = vmul.f32 %v3559_v21, %v1074_v8  ;;  %v2013_v44 = vld [vmem:[%s4059_s5] sm:$0xff]  ;;  %s2561_s5 = smov [#allocation6]  }
 0x1f8   :  { %4197 = vst [vmem:[#allocation15_spill] sm:$0xff] %v3695_v51  ;;  %v1076_v27 = vadd.f32 %v3347_v57, %v4201_v5  ;;  %v1202_v30 = vmul.f32 %v3583_v43, %v1079_v32  ;;  %v1081_v29 = vadd.f32 %v3347_v57, %v4202_v6  ;;  %v1204_v59 = vmul.f32 %v3585_v35, %v1084_v45  ;;  %s2045_s27 = sshll.u32 %s2561_s5, 4  ;;  %s2046_s27 = int_to_ptr.vmem [resolvable:$true] %s2045_s27 }
 0x1f9   :  { %4198 = vst [vmem:[#allocation14_spill] sm:$0xff] %v3701_v0  ;;  %v1198_v54 = vmul.f32 %v4199_v33, %v1069_v1  ;;  %v1086_v1 = vadd.f32 %v3347_v57, %v3561_v38  ;;  %v1206_v8 = vmul.f32 %v3591_v48, %v1089_v36  ;;  %2033 = vmatpush.msra.mxu0 %v2013_v44  ;;  %v2560_v32 = vmov -inf  }
 0x1fa   :  { %889 = vst.msk [vmem:[#allocation5] sm:$0x3] %vm888_vm12, %v2560_v32  ;;  %v3725_v38 = vmul.f32 %v1749_v56, %v1709_v19  ;;  %v3727_v36 = vmul.f32 %v1750_v2, %v1712_v25 }
 0x1fb   :  { %v1090_v18 = vpop.f32.mrf.mxu1 }
 0x1fc   :  { %v1091_v33 = vadd.f32 %v3347_v57, %v1090_v18  ;;  %v3729_v57 = vmul.f32 %v1750_v2, %v1714_v62  ;;  %v4203_v18 = vperm.slane %v3500_v7, 0 }
 0x1fe   :  { %v1199_v44 = vmul.f32 %v4203_v18, %v1071_v40 }
 0x21c   :  { %v1235_v51 = vpop.permute.xlu0 %1234 }
 0x21d   :  { %v1246_v63 = vmul.f32 %v1235_v51, %v1198_v54  ;;  %v1248_v5 = vmul.f32 %v1235_v51, %v1200_v60  ;;  %v1250_v6 = vmul.f32 %v1235_v51, %v1202_v30  ;;  %v1252_v45 = vmul.f32 %v1235_v51, %v1204_v59 }
 0x21e   :  { %v1254_v0 = vmul.f32 %v1235_v51, %v1206_v8  ;;  %v1256_v28 = vmul.f32 %v1235_v51, %v3565_v41  ;;  %v1258_v22 = vmul.f32 %v1235_v51, %v3571_v11  ;;  %v1260_v37 = vmul.f32 %v1235_v51, %v3578_v47 }
 0x21f   :  { %v1201_v54 = vmul.f32 %v3559_v21, %v1076_v27  ;;  %v1203_v60 = vmul.f32 %v3583_v43, %v1081_v29  ;;  %v1205_v30 = vmul.f32 %v3585_v35, %v1086_v1  ;;  %v1207_v41 = vmul.f32 %v3591_v48, %v1091_v33 }
 0x220   :  { %v1278_v11 = vsel %vm883_vm11, %v1246_v63, -inf  ;;  %v1287_v47 = vsel %vm883_vm11, %v1248_v5, -inf  ;;  %v1296_v19 = vsel %vm883_vm11, %v1250_v6, -inf  ;;  %v1305_v25 = vsel %vm883_vm11, %v1252_v45, -inf }
 0x221   :  { %v1314_v62 = vsel %vm883_vm11, %v1254_v0, -inf  ;;  %v1323_v7 = vsel %vm883_vm11, %v1256_v28, -inf  ;;  %v3744_v21 = vsel %vm883_vm11, %v1258_v22, -inf  ;;  %v3747_v43 = vsel %vm883_vm11, %v1260_v37, -inf }
 0x222   :  { %v3750_v35 = vmul.f32 %v3594_v53, %v1235_v51  ;;  %v3753_v48 = vmul.f32 %v3602_v61, %v1235_v51  ;;  %v3756_v56 = vmul.f32 %v3608_v31, %v1235_v51  ;;  %v3759_v40 = vmul.f32 %v3640_v52, %v1235_v51 }
 0x223   :  { %v3762_v28 = vmul.f32 %v3647_v42, %v1235_v51  ;;  %v3765_v22 = vmul.f32 %v3614_v50, %v1235_v51  ;;  %v3768_v37 = vmul.f32 %v3621_v3, %v1235_v51  ;;  %v3771_v53 = vmul.f32 %v3629_v10, %v1235_v51 }
 0x225   :  { %4204 = vst [vmem:[#allocation16_spill] sm:$0xff] %v3771_v53  ;;  %v4214_v53 = vld [vmem:[#allocation17_spill] sm:$0xff] }
 0x226   :  { %v1237_v0 = vpop.permute.xlu0 %1236 }
 0x227   :  { %v1247_v61 = vmul.f32 %v1237_v0, %v1199_v44  ;;  %v1249_v2 = vmul.f32 %v1237_v0, %v1201_v54  ;;  %v1251_v31 = vmul.f32 %v1237_v0, %v1203_v60  ;;  %v1253_v27 = vmul.f32 %v1237_v0, %v1205_v30  ;;  %v4208_v60 = vld [vmem:[#allocation20_spill] sm:$0xff] }
 0x228   :  { %v1255_v29 = vmul.f32 %v1237_v0, %v1207_v41  ;;  %v1257_v52 = vmul.f32 %v1237_v0, %v3568_v16  ;;  %v1259_v59 = vmul.f32 %v1237_v0, %v3575_v26  ;;  %v1261_v42 = vmul.f32 %v1237_v0, %v3581_v12  ;;  %v4209_v41 = vld [vmem:[#allocation19_spill] sm:$0xff] }
 0x229   :  { %v1279_v50 = vsel %vm883_vm11, %v1247_v61, -inf  ;;  %v1288_v1 = vsel %vm883_vm11, %v1249_v2, -inf  ;;  %v1297_v3 = vsel %vm883_vm11, %v1251_v31, -inf  ;;  %v1306_v10 = vsel %vm883_vm11, %v1253_v27, -inf  ;;  %v4212_v31 = vld [vmem:[#allocation35_spill] sm:$0xff] }
 0x22a   :  { %v1280_v51 = vmax.f32 %v1278_v11, %v1279_v50  ;;  %v1289_v8 = vmax.f32 %v1287_v47, %v1288_v1  ;;  %v1298_v33 = vmax.f32 %v1296_v19, %v1297_v3  ;;  %v1307_v32 = vmax.f32 %v1305_v25, %v1306_v10  ;;  %v4210_v47 = vld [vmem:[#allocation22_spill] sm:$0xff]  ;;  %v4211_v25 = vld [vmem:[#allocation27_spill] sm:$0xff] }
 0x22b   :  { %v1315_v63 = vsel %vm883_vm11, %v1255_v29, -inf  ;;  %v1324_v16 = vsel %vm883_vm11, %v1257_v52, -inf  ;;  %v1800_v26 = vmul.f32 %v3597_v24, %v1237_v0  ;;  %v1802_v12 = vmul.f32 %v3605_v23, %v1237_v0  ;;  %v4213_v27 = vld [vmem:[#allocation23_spill] sm:$0xff] }
 0x22c   :  { %v1804_v5 = vmul.f32 %v3611_v14, %v1237_v0  ;;  %v1806_v6 = vmul.f32 %v3645_v39, %v1237_v0  ;;  %v3787_v45 = vmul.f32 %v3651_v55, %v1237_v0  ;;  %v3790_v18 = vmul.f32 %v3617_v58, %v1237_v0  ;;  %v3804_v14 = vpop.permute.xlu1 %1238  ;;  %v4207_v55 = vld [vmem:[#allocation12_spill] sm:$0xff] }
 0x22d   :  { %v3793_v44 = vmul.f32 %v3626_v46, %v1237_v0  ;;  %v3796_v54 = vmul.f32 %v3634_v49, %v1237_v0  ;;  %v3799_v24 = vsel %vm883_vm11, %v1800_v26, -inf  ;;  %v3802_v23 = vsel %vm883_vm11, %v1802_v12, -inf }
 0x22e   :  { %v3807_v39 = vsel %vm883_vm11, %v1804_v5, -inf  ;;  %v3810_v58 = vsel %vm883_vm11, %v1806_v6, -inf  ;;  %v1262_v46 = vmul.f32 %v3804_v14, %v4207_v55  ;;  %v1264_v49 = vmul.f32 %v3804_v14, %v3514_v34 }
 0x22f   :  { %4205 = vst [vmem:[#allocation30_spill] sm:$0xff] %v3793_v44  ;;  %v1266_v30 = vmul.f32 %v3804_v14, %v4208_v60  ;;  %v1268_v11 = vmul.f32 %v3804_v14, %v4209_v41  ;;  %v3822_v19 = vmul.f32 %v3804_v14, %v4210_v47  ;;  %v3826_v0 = vmul.f32 %v3804_v14, %v4211_v25 }
 0x230   :  { %4206 = vst [vmem:[#allocation31_spill] sm:$0xff] %v3796_v54  ;;  %v1350_v61 = vsel %vm883_vm11, %v1262_v46, -inf  ;;  %v1359_v2 = vsel %vm883_vm11, %v1264_v49, -inf  ;;  %v3832_v34 = vmul.f32 %v3804_v14, %v4212_v31  ;;  %v3836_v29 = vmul.f32 %v3804_v14, %v4213_v27 }
 0x231   :  { %v1368_v52 = vsel %vm883_vm11, %v1266_v30, -inf  ;;  %v1377_v50 = vsel %vm883_vm11, %v1268_v11, -inf  ;;  %v1281_v1 = vrot.slane %v1280_v51, 4  ;;  %v1290_v3 = vrot.slane %v1289_v8, 4 }
 0x232   :  { %v1299_v10 = vrot.slane %v1298_v33, 4  ;;  %v1308_v26 = vrot.slane %v1307_v32, 4  ;;  %v1316_v12 = vmax.f32 %v1314_v62, %v1315_v63  ;;  %v1325_v5 = vmax.f32 %v1323_v7, %v1324_v16  ;;  %v4215_v7 = vld [vmem:[#allocation32_spill] sm:$0xff] }
 0x233   :  { %v1282_v6 = vmax.f32 %v1280_v51, %v1281_v1  ;;  %v1291_v55 = vmax.f32 %v1289_v8, %v1290_v3  ;;  %v1333_v46 = vsel %vm883_vm11, %v1259_v59, -inf  ;;  %v1342_v49 = vsel %vm883_vm11, %v1261_v42, -inf  ;;  %v4216_v8 = vld [vmem:[#allocation26_spill] sm:$0xff]  ;;  %v4217_v59 = vld [vmem:[#allocation33_spill] sm:$0xff]  ;;  %v4218_v42 = vld [vmem:[#allocation36_spill] sm:$0xff] }
 0x234   :  { %v1300_v60 = vmax.f32 %v1298_v33, %v1299_v10  ;;  %v1309_v41 = vmax.f32 %v1307_v32, %v1308_v26  ;;  %v1317_v47 = vrot.slane %v1316_v12, 4  ;;  %v1326_v25 = vrot.slane %v1325_v5, 4  ;;  %v1241_v31 = vpop.permute.xlu1 %1240  ;;  %v4219_v32 = vld [vmem:[#allocation21_spill] sm:$0xff]  ;;  %v4220_v3 = vld [vmem:[#allocation28_spill] sm:$0xff] }
 0x235   :  { %v1283_v30 = vrot.slane %v1282_v6, 2  ;;  %v1292_v27 = vrot.slane %v1291_v55, 2  ;;  %v1334_v11 = vmax.f32 %v3744_v21, %v1333_v46  ;;  %v1343_v54 = vmax.f32 %v3747_v43, %v1342_v49  ;;  %v4221_v26 = vld [vmem:[#allocation37_spill] sm:$0xff] }
 0x236   :  { %v1263_v62 = vmul.f32 %v1241_v31, %v4214_v53  ;;  %v1265_v51 = vmul.f32 %v1241_v31, %v4215_v7  ;;  %v1267_v63 = vmul.f32 %v1241_v31, %v4216_v8  ;;  %v1269_v16 = vmul.f32 %v1241_v31, %v4217_v59 }
 0x237   :  { %v1271_v33 = vmul.f32 %v1241_v31, %v4218_v42  ;;  %v1273_v1 = vmul.f32 %v1241_v31, %v4219_v32  ;;  %v3851_v10 = vmul.f32 %v1241_v31, %v4220_v3  ;;  %v3854_v44 = vmul.f32 %v1241_v31, %v4221_v26 }
 0x238   :  { %v1351_v21 = vsel %vm883_vm11, %v1263_v62, -inf  ;;  %v1360_v43 = vsel %vm883_vm11, %v1265_v51, -inf  ;;  %v1369_v53 = vsel %vm883_vm11, %v1267_v63, -inf  ;;  %v1378_v46 = vsel %vm883_vm11, %v1269_v16, -inf }
 0x239   :  { %v1352_v49 = vmax.f32 %v1350_v61, %v1351_v21  ;;  %v1361_v7 = vmax.f32 %v1359_v2, %v1360_v43  ;;  %v1370_v8 = vmax.f32 %v1368_v52, %v1369_v53  ;;  %v1379_v59 = vmax.f32 %v1377_v50, %v1378_v46 }
 0x23a   :  { %v3861_v42 = vsel %vm883_vm11, %v1271_v33, -inf  ;;  %v3864_v32 = vsel %vm883_vm11, %v1273_v1, -inf  ;;  %v1816_v3 = vmul.f32 %v3659_v20, %v1241_v31  ;;  %v1818_v62 = vmul.f32 %v3668_v13, %v1241_v31 }
 0x23b   :  { %v1820_v51 = vmul.f32 %v3678_v15, %v1241_v31  ;;  %v1822_v63 = vmul.f32 %v3684_v4, %v1241_v31  ;;  %v3871_v16 = vmul.f32 %v3692_v9, %v1241_v31  ;;  %v3874_v61 = vmul.f32 %v3699_v17, %v1241_v31 }
 0x23c   :  { %v3877_v2 = vmul.f32 %v3725_v38, %v1241_v31  ;;  %v3880_v52 = vmul.f32 %v3729_v57, %v1241_v31  ;;  %v3883_v20 = vsel %vm883_vm11, %v1816_v3, -inf  ;;  %v3886_v13 = vsel %vm883_vm11, %v1818_v62, -inf }
 0x23d   :  { %4222 = vst [vmem:[#allocation25_spill] sm:$0xff] %v3871_v16  ;;  %v3889_v15 = vsel %vm883_vm11, %v1820_v51, -inf  ;;  %v3892_v4 = vsel %vm883_vm11, %v1822_v63, -inf  ;;  %v1284_v9 = vmax.f32 %v1282_v6, %v1283_v30  ;;  %v1293_v17 = vmax.f32 %v1291_v55, %v1292_v27 }
 0x23e   :  { %4223 = vst [vmem:[#allocation18_spill] sm:$0xff] %v3874_v61  ;;  %v1301_v50 = vrot.slane %v1300_v60, 2  ;;  %v1310_v38 = vrot.slane %v1309_v41, 2  ;;  %v1318_v33 = vmax.f32 %v1316_v12, %v1317_v47  ;;  %v1327_v1 = vmax.f32 %v1325_v5, %v1326_v25 }
 0x23f   :  { %4224 = vst [vmem:[#allocation34_spill] sm:$0xff] %v3877_v2  ;;  %v1285_v57 = vrot.slane %v1284_v9, 1  ;;  %v1294_v31 = vrot.slane %v1293_v17, 1  ;;  %v1335_v26 = vrot.slane %v1334_v11, 4  ;;  %v1344_v21 = vrot.slane %v1343_v54, 4 }
 0x240   :  { %4225 = vst [vmem:[#allocation9_spill] sm:$0xff] %v3880_v52  ;;  %v1302_v43 = vmax.f32 %v1300_v60, %v1301_v50  ;;  %v1311_v53 = vmax.f32 %v1309_v41, %v1310_v38  ;;  %v1319_v46 = vrot.slane %v1318_v33, 2  ;;  %v1328_v3 = vrot.slane %v1327_v1, 2 }
 0x241   :  { %4226 = vst [vmem:[#allocation24_spill] sm:$0xff] %v3892_v4  ;;  %v1286_v62 = vmax.f32 %v1284_v9, %v1285_v57  ;;  %v1295_v51 = vmax.f32 %v1293_v17, %v1294_v31  ;;  %v1336_v52 = vmax.f32 %v1334_v11, %v1335_v26  ;;  %v1345_v2 = vmax.f32 %v1343_v54, %v1344_v21 }
 0x242   :  { %v1303_v63 = vrot.slane %v1302_v43, 1  ;;  %v1312_v61 = vrot.slane %v1311_v53, 1  ;;  %v1320_v6 = vmax.f32 %v1318_v33, %v1319_v46  ;;  %v1329_v55 = vmax.f32 %v1327_v1, %v1328_v3 }
 0x243   :  { %v1337_v30 = vrot.slane %v1336_v52, 2  ;;  %v1346_v27 = vrot.slane %v1345_v2, 2  ;;  %v1353_v12 = vrot.slane %v1352_v49, 4  ;;  %v1362_v5 = vrot.slane %v1361_v7, 4 }
 0x244   :  { %v1304_v47 = vmax.f32 %v1302_v43, %v1303_v63  ;;  %v1313_v25 = vmax.f32 %v1311_v53, %v1312_v61  ;;  %v1321_v16 = vrot.slane %v1320_v6, 1  ;;  %v1330_v4 = vrot.slane %v1329_v55, 1 }
 0x245   :  { %v1338_v60 = vmax.f32 %v1336_v52, %v1337_v30  ;;  %v1347_v41 = vmax.f32 %v1345_v2, %v1346_v27  ;;  %v1354_v50 = vmax.f32 %v1352_v49, %v1353_v12  ;;  %v1363_v38 = vmax.f32 %v1361_v7, %v1362_v5 }
 0x246   :  { %v1322_v9 = vmax.f32 %v1320_v6, %v1321_v16  ;;  %v1331_v17 = vmax.f32 %v1329_v55, %v1330_v4  ;;  %v1371_v11 = vrot.slane %v1370_v8, 4  ;;  %v1380_v54 = vrot.slane %v1379_v59, 4 }
 0x247   :  { %v1339_v57 = vrot.slane %v1338_v60, 1  ;;  %v1348_v31 = vrot.slane %v1347_v41, 1  ;;  %v1355_v33 = vrot.slane %v1354_v50, 2  ;;  %v1364_v1 = vrot.slane %v1363_v38, 2 }
 0x248   :  { %v1372_v26 = vmax.f32 %v1370_v8, %v1371_v11  ;;  %v1381_v21 = vmax.f32 %v1379_v59, %v1380_v54  ;;  %v1386_v43 = vsel %vm883_vm11, %v3822_v19, -inf  ;;  %v1395_v61 = vsel %vm883_vm11, %v3826_v0, -inf }
 0x249   :  { %v1340_v52 = vmax.f32 %v1338_v60, %v1339_v57  ;;  %v1349_v2 = vmax.f32 %v1347_v41, %v1348_v31  ;;  %v1356_v49 = vmax.f32 %v1354_v50, %v1355_v33  ;;  %v1365_v7 = vmax.f32 %v1363_v38, %v1364_v1 }
 0x24a   :  { %v1373_v16 = vrot.slane %v1372_v26, 2  ;;  %v1382_v4 = vrot.slane %v1381_v21, 2  ;;  %v1388_v53 = vmax.f32 %v1386_v43, %v3861_v42  ;;  %v1397_v46 = vmax.f32 %v1395_v61, %v3864_v32 }
 0x24b   :  { %v1357_v3 = vrot.slane %v1356_v49, 1  ;;  %v1366_v63 = vrot.slane %v1365_v7, 1  ;;  %v1404_v8 = vsel %vm883_vm11, %v3832_v34, -inf  ;;  %v1405_v19 = vsel %vm883_vm11, %v3851_v10, -inf }
 0x24c   :  { %v1374_v59 = vmax.f32 %v1372_v26, %v1373_v16  ;;  %v1383_v0 = vmax.f32 %v1381_v21, %v1382_v4  ;;  %v1389_v6 = vrot.slane %v1388_v53, 4  ;;  %v1398_v55 = vrot.slane %v1397_v46, 4 }
 0x24d   :  { %v1358_v30 = vmax.f32 %v1356_v49, %v1357_v3  ;;  %v1367_v27 = vmax.f32 %v1365_v7, %v1366_v63  ;;  %v1406_v12 = vmax.f32 %v1404_v8, %v1405_v19  ;;  %v1413_v42 = vsel %vm883_vm11, %v3836_v29, -inf }
 0x24e   :  { %v1375_v5 = vrot.slane %v1374_v59, 1  ;;  %v1384_v32 = vrot.slane %v1383_v0, 1  ;;  %v1390_v60 = vmax.f32 %v1388_v53, %v1389_v6  ;;  %v1399_v41 = vmax.f32 %v1397_v46, %v1398_v55 }
 0x24f   :  { %v1407_v50 = vrot.slane %v1406_v12, 4  ;;  %v1414_v34 = vsel %vm883_vm11, %v3854_v44, -inf  ;;  %v1422_v10 = vsel %vm883_vm11, %v1286_v62, -inf  ;;  %v1423_v38 = vsel %vm883_vm11, %v1295_v51, -inf }
 0x250   :  { %v1376_v11 = vmax.f32 %v1374_v59, %v1375_v5  ;;  %v1385_v54 = vmax.f32 %v1383_v0, %v1384_v32  ;;  %v1391_v57 = vrot.slane %v1390_v60, 2  ;;  %v1400_v31 = vrot.slane %v1399_v41, 2 }
 0x251   :  { %v1408_v33 = vmax.f32 %v1406_v12, %v1407_v50  ;;  %v1415_v1 = vmax.f32 %v1413_v42, %v1414_v34  ;;  %v1424_v29 = vsel %vm883_vm11, %v1304_v47, -inf  ;;  %v1426_v26 = vsel %vm883_vm11, %v1313_v25, -inf  ;;  %v4227_v34 = vld [vmem:[#allocation38_spill] sm:$0xff] }
 0x252   :  { %v1392_v21 = vmax.f32 %v1390_v60, %v1391_v57  ;;  %v1401_v43 = vmax.f32 %v1399_v41, %v1400_v31  ;;  %v1425_v61 = vmax.f32 %v1422_v10, %v1424_v29  ;;  %v1427_v49 = vmax.f32 %v1423_v38, %v1426_v26  ;;  %v4229_v38 = vld [vmem:[#allocation39_spill] sm:$0xff]  ;;  %v4231_v26 = vld [vmem:[#allocation10_spill] sm:$0xff] }
 0x253   :  { %v1409_v7 = vrot.slane %v1408_v33, 2  ;;  %v1416_v44 = vrot.slane %v1415_v1, 4  ;;  %v1428_v62 = vsel %vm883_vm11, %v1322_v9, -inf  ;;  %v1430_v51 = vsel %vm883_vm11, %v1331_v17, -inf }
 0x254   :  { %v1393_v16 = vrot.slane %v1392_v21, 1  ;;  %v1402_v4 = vrot.slane %v1401_v43, 1  ;;  %v1429_v53 = vmax.f32 %v1425_v61, %v1428_v62  ;;  %v1431_v46 = vmax.f32 %v1427_v49, %v1430_v51  ;;  %v4233_v49 = vld [vmem:[#allocation14_spill] sm:$0xff] }
 0x255   :  { %v1410_v3 = vmax.f32 %v1408_v33, %v1409_v7  ;;  %v1417_v63 = vmax.f32 %v1415_v1, %v1416_v44  ;;  %v1432_v47 = vsel %vm883_vm11, %v1340_v52, -inf  ;;  %v1434_v25 = vsel %vm883_vm11, %v1349_v2, -inf  ;;  %v4230_v1 = vld [vmem:[#allocation13_spill] sm:$0xff] }
 0x256   :  { %v1394_v8 = vmax.f32 %v1392_v21, %v1393_v16  ;;  %v1403_v19 = vmax.f32 %v1401_v43, %v1402_v4  ;;  %v1433_v59 = vmax.f32 %v1429_v53, %v1432_v47  ;;  %v1435_v0 = vmax.f32 %v1431_v46, %v1434_v25  ;;  %v4232_v43 = vld [vmem:[#allocation15_spill] sm:$0xff] }
 0x257   :  { %v1411_v6 = vrot.slane %v1410_v3, 1  ;;  %v1418_v55 = vrot.slane %v1417_v63, 2  ;;  %v1437_v9 = vsel %vm883_vm11, %v1358_v30, -inf  ;;  %v1438_v17 = vsel %vm883_vm11, %v1367_v27, -inf  ;;  %v4228_v30 = vld [vmem:[#allocation29_spill] sm:$0xff] }
 0x258   :  { %v1436_v12 = vmax.f32 %v1433_v59, %v1435_v0  ;;  %v1439_v42 = vsel %vm883_vm11, %v1376_v11, -inf  ;;  %v1441_v5 = vsel %vm883_vm11, %v1385_v54, -inf  ;;  %v1443_v32 = vsel %vm883_vm11, %v1394_v8, -inf  ;;  %v1452_v0 = vld [vmem:[#allocation5] sm:$0x3] }
 0x259   :  { %v1412_v52 = vmax.f32 %v1410_v3, %v1411_v6  ;;  %v1419_v60 = vmax.f32 %v1417_v63, %v1418_v55  ;;  %v1440_v2 = vmax.f32 %v1437_v9, %v1439_v42  ;;  %v1442_v41 = vmax.f32 %v1438_v17, %v1441_v5 }
 0x25a   :  { %v1445_v50 = vsel %vm883_vm11, %v1403_v19, -inf  ;;  %v3924_v10 = vmul.f32 %v4227_v34, %v3804_v14  ;;  %v3928_v27 = vmul.f32 %v4228_v30, %v3804_v14  ;;  %v3932_v11 = vmul.f32 %v4229_v38, %v3804_v14  ;;  %v4234_v34 = vld [vmem:[#allocation30_spill] sm:$0xff] }
 0x25b   :  { %v1420_v54 = vrot.slane %v1419_v60, 1  ;;  %v1444_v57 = vmax.f32 %v1440_v2, %v1443_v32  ;;  %v1446_v31 = vmax.f32 %v1442_v41, %v1445_v50  ;;  %v1447_v33 = vsel %vm883_vm11, %v1412_v52, -inf }
 0x25c   :  { %v3937_v29 = vmul.f32 %v4230_v1, %v3804_v14  ;;  %v3941_v21 = vmul.f32 %v4231_v26, %v3804_v14  ;;  %v3945_v61 = vmul.f32 %v4232_v43, %v3804_v14  ;;  %v3949_v7 = vmul.f32 %v4233_v49, %v3804_v14 }
 0x25d   :  { %v1421_v44 = vmax.f32 %v1419_v60, %v1420_v54  ;;  %v1448_v62 = vmax.f32 %v1444_v57, %v1447_v33  ;;  %v3953_v51 = vmul.f32 %v3727_v36, %v3804_v14  ;;  %v1831_v16 = vsel %vm883_vm11, %v3750_v35, -inf }
 0x25e   :  { %v1833_v4 = vmax.f32 %v1831_v16, %v3799_v24  ;;  %v1840_v53 = vsel %vm883_vm11, %v3753_v48, -inf  ;;  %v1849_v46 = vsel %vm883_vm11, %v3756_v56, -inf  ;;  %v1858_v3 = vsel %vm883_vm11, %v3759_v40, -inf }
 0x25f   :  { %v1449_v63 = vsel %vm883_vm11, %v1421_v44, -inf  ;;  %v1842_v47 = vmax.f32 %v1840_v53, %v3802_v23  ;;  %v1851_v36 = vmax.f32 %v1849_v46, %v3807_v39  ;;  %v1860_v14 = vmax.f32 %v1858_v3, %v3810_v58  ;;  %v4236_v53 = vld [vmem:[#allocation31_spill] sm:$0xff] }
 0x260   :  { %v1450_v35 = vmax.f32 %v1446_v31, %v1449_v63  ;;  %v1834_v25 = vrot.slane %v1833_v4, 4  ;;  %v1867_v24 = vsel %vm883_vm11, %v3762_v28, -inf  ;;  %v1868_v48 = vsel %vm883_vm11, %v3787_v45, -inf }
 0x261   :  { %v1843_v56 = vrot.slane %v1842_v47, 4  ;;  %v1852_v8 = vrot.slane %v1851_v36, 4  ;;  %v1861_v19 = vrot.slane %v1860_v14, 4  ;;  %v1869_v40 = vmax.f32 %v1867_v24, %v1868_v48 }
 0x262   :  { %v1451_v59 = vmax.f32 %v1448_v62, %v1450_v35  ;;  %v1835_v6 = vmax.f32 %v1833_v4, %v1834_v25  ;;  %v1876_v23 = vsel %vm883_vm11, %v3765_v22, -inf  ;;  %v1877_v39 = vsel %vm883_vm11, %v3790_v18, -inf }
 0x263   :  { %v1844_v58 = vmax.f32 %v1842_v47, %v1843_v56  ;;  %v1853_v55 = vmax.f32 %v1851_v36, %v1852_v8  ;;  %v1862_v9 = vmax.f32 %v1860_v14, %v1861_v19  ;;  %v1870_v28 = vrot.slane %v1869_v40, 4 }
 0x264   :  { %v1455_v17 = vsel %vm279_vm2, %v1451_v59, %v1436_v12  ;;  %v1836_v45 = vrot.slane %v1835_v6, 2  ;;  %v1878_v42 = vmax.f32 %v1876_v23, %v1877_v39  ;;  %v1885_v5 = vsel %vm883_vm11, %v3768_v37, -inf  ;;  %v4235_v37 = vld [vmem:[#allocation16_spill] sm:$0xff] }
 0x265   :  { %v1457_v32 = vmax.f32 %v1452_v0, %v1455_v17  ;;  %v1845_v52 = vrot.slane %v1844_v58, 2  ;;  %v1854_v60 = vrot.slane %v1853_v55, 2  ;;  %v1863_v2 = vrot.slane %v1862_v9, 2 }
 0x266   :  { %v1837_v41 = vmax.f32 %v1835_v6, %v1836_v45  ;;  %v1871_v22 = vmax.f32 %v1869_v40, %v1870_v28  ;;  %v1879_v50 = vrot.slane %v1878_v42, 4  ;;  %v1886_v18 = vsel %vm883_vm11, %v4234_v34, -inf }
 0x267   :  { %1458 = vst.msk [vmem:[#allocation5] sm:$0x3] %vm888_vm12, %v1457_v32  ;;  %v1846_v30 = vmax.f32 %v1844_v58, %v1845_v52  ;;  %v1855_v38 = vmax.f32 %v1853_v55, %v1854_v60  ;;  %v1864_v12 = vmax.f32 %v1862_v9, %v1863_v2  ;;  %v1887_v54 = vmax.f32 %v1885_v5, %v1886_v18  ;;  %v4237_v9 = vld [vmem:[#allocation24_spill] sm:$0xff]  ;;  %v4238_v52 = vld [vmem:[#allocation25_spill] sm:$0xff] }
 0x268   :  { %v1838_v57 = vrot.slane %v1837_v41, 1  ;;  %v1872_v31 = vrot.slane %v1871_v22, 2  ;;  %v1880_v33 = vmax.f32 %v1878_v42, %v1879_v50  ;;  %v1894_v1 = vsel %vm883_vm11, %v4235_v37, -inf }
 0x269   :  { %v1847_v26 = vrot.slane %v1846_v30, 1  ;;  %v1856_v43 = vrot.slane %v1855_v38, 1  ;;  %v1865_v49 = vrot.slane %v1864_v12, 1  ;;  %v1888_v44 = vrot.slane %v1887_v54, 4 }
 0x26a   :  { %v3984_v62 = vmax.f32 %v1837_v41, %v1838_v57  ;;  %v1873_v16 = vmax.f32 %v1871_v22, %v1872_v31  ;;  %v1881_v4 = vrot.slane %v1880_v33, 2  ;;  %v1895_v46 = vsel %vm883_vm11, %v4236_v53, -inf }
 0x26b   :  { %v3988_v3 = vmax.f32 %v1846_v30, %v1847_v26  ;;  %v3990_v63 = vmax.f32 %v1855_v38, %v1856_v43  ;;  %v3992_v47 = vmax.f32 %v1864_v12, %v1865_v49  ;;  %v1889_v36 = vmax.f32 %v1887_v54, %v1888_v44 }
 0x26c   :  { %v1874_v14 = vrot.slane %v1873_v16, 1  ;;  %v1882_v35 = vmax.f32 %v1880_v33, %v1881_v4  ;;  %v1896_v25 = vmax.f32 %v1894_v1, %v1895_v46  ;;  %v1903_v24 = vsel %vm883_vm11, %v3924_v10, -inf }
 0x26d   :  { %v1890_v48 = vrot.slane %v1889_v36, 2  ;;  %v1905_v56 = vmax.f32 %v1903_v24, %v3883_v20  ;;  %v1912_v8 = vsel %vm883_vm11, %v3928_v27, -inf  ;;  %v1921_v19 = vsel %vm883_vm11, %v3932_v11, -inf }
 0x26e   :  { %v4001_v40 = vmax.f32 %v1873_v16, %v1874_v14  ;;  %v1883_v59 = vrot.slane %v1882_v35, 1  ;;  %v1897_v0 = vrot.slane %v1896_v25, 4  ;;  %v1914_v6 = vmax.f32 %v1912_v8, %v3886_v13  ;;  %v4240_v14 = vld [vmem:[#allocation34_spill] sm:$0xff] }
 0x26f   :  { %v1891_v23 = vmax.f32 %v1889_v36, %v1890_v48  ;;  %v1906_v39 = vrot.slane %v1905_v56, 4  ;;  %v1923_v58 = vmax.f32 %v1921_v19, %v3889_v15  ;;  %v1930_v10 = vsel %vm883_vm11, %v3937_v29, -inf }
 0x270   :  { %v4007_v20 = vmax.f32 %v1882_v35, %v1883_v59  ;;  %v1898_v55 = vmax.f32 %v1896_v25, %v1897_v0  ;;  %v1915_v27 = vrot.slane %v1914_v6, 4  ;;  %v1932_v28 = vmax.f32 %v1930_v10, %v4237_v9 }
 0x271   :  { %v1892_v11 = vrot.slane %v1891_v23, 1  ;;  %v1907_v17 = vmax.f32 %v1905_v56, %v1906_v39  ;;  %v1924_v45 = vrot.slane %v1923_v58, 4  ;;  %v1939_v42 = vsel %vm883_vm11, %v3941_v21, -inf  ;;  %v4239_v21 = vld [vmem:[#allocation18_spill] sm:$0xff] }
 0x272   :  { %v1899_v13 = vrot.slane %v1898_v55, 2  ;;  %v1916_v5 = vmax.f32 %v1914_v6, %v1915_v27  ;;  %v1933_v32 = vrot.slane %v1932_v28, 4  ;;  %v1940_v15 = vsel %vm883_vm11, %v4238_v52, -inf }
 0x273   :  { %v1893_v60 = vmax.f32 %v1891_v23, %v1892_v11  ;;  %v1908_v29 = vrot.slane %v1907_v17, 2  ;;  %v1925_v2 = vmax.f32 %v1923_v58, %v1924_v45  ;;  %v1941_v41 = vmax.f32 %v1939_v42, %v1940_v15 }
 0x274   :  { %v1900_v22 = vmax.f32 %v1898_v55, %v1899_v13  ;;  %v1917_v50 = vrot.slane %v1916_v5, 2  ;;  %v1934_v34 = vmax.f32 %v1932_v28, %v1933_v32  ;;  %v1948_v18 = vsel %vm883_vm11, %v3945_v61, -inf }
 0x275   :  { %v1909_v30 = vmax.f32 %v1907_v17, %v1908_v29  ;;  %v1926_v38 = vrot.slane %v1925_v2, 2  ;;  %v1942_v12 = vrot.slane %v1941_v41, 4  ;;  %v1949_v54 = vsel %vm883_vm11, %v4239_v21, -inf }
 0x276   :  { %v1901_v57 = vrot.slane %v1900_v22, 1  ;;  %v1918_v31 = vmax.f32 %v1916_v5, %v1917_v50  ;;  %v1935_v33 = vrot.slane %v1934_v34, 2  ;;  %v1950_v37 = vmax.f32 %v1948_v18, %v1949_v54 }
 0x277   :  { %v1910_v1 = vrot.slane %v1909_v30, 1  ;;  %v1927_v26 = vmax.f32 %v1925_v2, %v1926_v38  ;;  %v1943_v43 = vmax.f32 %v1941_v41, %v1942_v12  ;;  %v1957_v49 = vsel %vm883_vm11, %v3949_v7, -inf  ;;  %v4241_v7 = vld [vmem:[#allocation9_spill] sm:$0xff] }
 0x278   :  { %v1902_v44 = vmax.f32 %v1900_v22, %v1901_v57  ;;  %v1919_v16 = vrot.slane %v1918_v31, 1  ;;  %v1936_v4 = vmax.f32 %v1934_v34, %v1935_v33  ;;  %v1951_v61 = vrot.slane %v1950_v37, 4 }
 0x279   :  { %v1911_v53 = vmax.f32 %v1909_v30, %v1910_v1  ;;  %v1928_v46 = vrot.slane %v1927_v26, 1  ;;  %v1944_v36 = vrot.slane %v1943_v43, 2  ;;  %v1958_v35 = vsel %vm883_vm11, %v4240_v14, -inf }
 0x27a   :  { %v1920_v25 = vmax.f32 %v1918_v31, %v1919_v16  ;;  %v1937_v24 = vrot.slane %v1936_v4, 1  ;;  %v1952_v48 = vmax.f32 %v1950_v37, %v1951_v61  ;;  %v1959_v56 = vmax.f32 %v1957_v49, %v1958_v35 }
 0x27b   :  { %v1929_v8 = vmax.f32 %v1927_v26, %v1928_v46  ;;  %v1945_v19 = vmax.f32 %v1943_v43, %v1944_v36  ;;  %v1966_v59 = vsel %vm883_vm11, %v3953_v51, -inf  ;;  %v1967_v0 = vsel %vm883_vm11, %v4241_v7, -inf }
 0x27c   :  { %v1938_v6 = vmax.f32 %v1936_v4, %v1937_v24  ;;  %v1953_v23 = vrot.slane %v1952_v48, 2  ;;  %v1960_v39 = vrot.slane %v1959_v56, 4  ;;  %v1968_v58 = vmax.f32 %v1966_v59, %v1967_v0 }
 0x27d   :  { %v1946_v10 = vrot.slane %v1945_v19, 1  ;;  %v1975_v55 = vsel %vm883_vm11, %v3984_v62, -inf  ;;  %v1976_v27 = vsel %vm883_vm11, %v3988_v3, -inf  ;;  %v1977_v9 = vsel %vm883_vm11, %v3990_v63, -inf }
 0x27e   :  { %v1954_v28 = vmax.f32 %v1952_v48, %v1953_v23  ;;  %v1961_v11 = vmax.f32 %v1959_v56, %v1960_v39  ;;  %v1969_v51 = vrot.slane %v1968_v58, 4  ;;  %v1978_v17 = vmax.f32 %v1975_v55, %v1977_v9 }
 0x27f   :  { %v1947_v45 = vmax.f32 %v1945_v19, %v1946_v10  ;;  %v1979_v42 = vsel %vm883_vm11, %v3992_v47, -inf  ;;  %v1981_v13 = vsel %vm883_vm11, %v4001_v40, -inf  ;;  %v1983_v62 = vsel %vm883_vm11, %v4007_v20, -inf }
 0x280   :  { %v1955_v5 = vrot.slane %v1954_v28, 1  ;;  %v1962_v32 = vrot.slane %v1961_v11, 2  ;;  %v1970_v3 = vmax.f32 %v1968_v58, %v1969_v51  ;;  %v1980_v52 = vmax.f32 %v1976_v27, %v1979_v42 }
 0x281   :  { %v1982_v15 = vmax.f32 %v1978_v17, %v1981_v13  ;;  %v1985_v63 = vsel %vm883_vm11, %v1893_v60, -inf  ;;  %v1987_v29 = vsel %vm883_vm11, %v1902_v44, -inf  ;;  %v1990_v2 = vsel %vm883_vm11, %v1911_v53, -inf  ;;  %v2005_v53 = vld [vmem:[#allocation5] sm:$0x3] }
 0x282   :  { %v1956_v41 = vmax.f32 %v1954_v28, %v1955_v5  ;;  %v1963_v22 = vmax.f32 %v1961_v11, %v1962_v32  ;;  %v1971_v47 = vrot.slane %v1970_v3, 2  ;;  %v1984_v50 = vmax.f32 %v1980_v52, %v1983_v62 }
 0x283   :  { %v1986_v34 = vmax.f32 %v1982_v15, %v1985_v63  ;;  %v1991_v40 = vsel %vm883_vm11, %v1920_v25, -inf  ;;  %v1992_v20 = vsel %vm883_vm11, %v1929_v8, -inf  ;;  %v1994_v18 = vsel %vm883_vm11, %v1938_v6, -inf }
 0x284   :  { %v1964_v30 = vrot.slane %v1963_v22, 1  ;;  %v1972_v38 = vmax.f32 %v1970_v3, %v1971_v47  ;;  %v1988_v12 = vmax.f32 %v1984_v50, %v1987_v29  ;;  %v1993_v21 = vmax.f32 %v1990_v2, %v1992_v20 }
 0x285   :  { %v1995_v60 = vmax.f32 %v1991_v40, %v1994_v18  ;;  %v1996_v54 = vsel %vm883_vm11, %v1947_v45, -inf  ;;  %v1998_v57 = vsel %vm883_vm11, %v1956_v41, -inf }
 0x286   :  { %v1965_v31 = vmax.f32 %v1963_v22, %v1964_v30  ;;  %v1973_v33 = vrot.slane %v1972_v38, 1  ;;  %v1989_v37 = vmax.f32 %v1986_v34, %v1988_v12  ;;  %v1997_v1 = vmax.f32 %v1993_v21, %v1996_v54 }
 0x287   :  { %v1999_v26 = vmax.f32 %v1995_v60, %v1998_v57 }
 0x288   :  { %v1974_v43 = vmax.f32 %v1972_v38, %v1973_v33  ;;  %v2000_v49 = vsel %vm883_vm11, %v1965_v31, -inf }
 0x289   :  { %v2001_v44 = vmax.f32 %v1997_v1, %v2000_v49 }
 0x28a   :  { %v2002_v16 = vsel %vm883_vm11, %v1974_v43, -inf }
 0x28b   :  { %v2003_v4 = vmax.f32 %v1999_v26, %v2002_v16 }
 0x28d   :  { %v2004_v61 = vmax.f32 %v2001_v44, %v2003_v4 }
 0x28f   :  { %v2008_v46 = vsel %vm279_vm2, %v2004_v61, %v1989_v37 }
 0x290   :  { %v2010_v36 = vmax.f32 %v2005_v53, %v2008_v46 }
 0x292   :  { %2011 = vst.msk [vmem:[#allocation5] sm:$0x3] %vm888_vm12, %v2010_v36 }
 0x299   :  { %v2012_v14 = vld [vmem:[#allocation5] sm:$0x3] }
 0x29a   :  { %2298 = vmatmul.msk.f32.vlgmr.msra.gmra.mxu0 %vm883_vm11, %v2012_v14 }
 0x317   :  { %v2035_v35 = vpop.f32.mrf.mxu0 }
 0x318   :  { %v2038_v25 = vmax.f32 %v2035_v35, 0.0 }
 0x31a   :  { %2039 = vst [vmem:[#allocation6] sm:$0x3] %v2038_v25 }
 0x31b   :  { %2050 = dma.vmem_to_hbm [thread:$0]  %s2046_s27, 32, %s2048_s30, [#allocation7]  }
 0x31c   :  { %2556 = dma.done.wait [#allocation7], 32  }
 0x31d   :  { %2557 = vsyncadd [#allocation7], 4294967264 }
 0x31e   :  { %2055 = vsyncpa [#allocation7], 1 }

</bundles_post_ra>
